<compile_context>
chip_gen: v7x
topology: tpu7x:2x2x1
jax: 0.10.0
libtpu: 0.0.40
codegen_flags: <defaults>
</compile_context>

<pallas_src>
import functools

import jax
import jax.numpy as jnp
from jax.experimental import pallas as pl
from jax.experimental.pallas import tpu as pltpu

_LANE = 128
_SUBLANE_F32 = 8
_SUBLANE_BF16 = 16


def _round_up(x, m):
    return ((x + m - 1) // m) * m


def _cdiv(a, b):
    return (a + b - 1) // b


def _mlp_fused_kernel(x_ref, w1_ref, b1_ref, w2_ref, b2_ref, o_ref):
    """One (tm, N_pad) output tile; all weights/biases fully resident in VMEM.

    h   = relu(x @ W1 + b1)          (MXU, f32 epilogue)
    out = relu(h @ W2 + b2)          (MXU, f32 epilogue, cast to out dtype on store)
    """
    h = jnp.dot(x_ref[...], w1_ref[...], preferred_element_type=jnp.float32)
    h = jnp.maximum(h + b1_ref[...], 0.0)
    y = jnp.dot(h.astype(w2_ref.dtype), w2_ref[...], preferred_element_type=jnp.float32)
    o_ref[...] = jnp.maximum(y + b2_ref[...], 0.0).astype(o_ref.dtype)


@functools.partial(jax.jit, static_argnames=("tm_cap",))
def mlp_forward(x, params, *, tm_cap=512):
    """relu(relu(x @ w1 + b1) @ w2 + b2), both layers fused in one single-pass kernel.

    x: (M, K1); w1: (K1, H); b1: (H,); w2: (H, N); b2: (N,)
    Weights may be bf16 (MXU-native operands); biases stay f32; output keeps x.dtype.
    """
    w1, b1, w2, b2 = params
    M, K1 = x.shape
    K1w, H = w1.shape
    Hw, N = w2.shape
    assert K1 == K1w and H == Hw and b1.shape == (H,) and b2.shape == (N,)

    compute_dtype = w1.dtype                      # matmul operand dtype
    sub = _SUBLANE_BF16 if compute_dtype == jnp.bfloat16 else _SUBLANE_F32

    # --- balanced M tiling (avoid near-2x padding on awkward batch sizes) ----------------
    n_tiles = max(1, _cdiv(M, tm_cap))
    tm = _round_up(_cdiv(M, n_tiles), sub)
    M_pad = _round_up(M, tm)
    N_pad = _round_up(N, _LANE)                   # lane-dense output block (>=128 wide)

    # Wrapper-side cast + padding (padded rows/cols are zero; sliced off below).
    x_p = x.astype(compute_dtype)
    if M_pad != M:
        x_p = jnp.pad(x_p, ((0, M_pad - M), (0, 0)))
    w2_p = w2 if N_pad == N else jnp.pad(w2, ((0, 0), (0, N_pad - N)))
    b2_p = (b2 if N_pad == N else jnp.pad(b2, (0, N_pad - N))).reshape(1, N_pad).astype(jnp.float32)
    b1_2d = b1.reshape(1, H).astype(jnp.float32)

    grid = (M_pad // tm,)

    out = pl.pallas_call(
        _mlp_fused_kernel,
        out_shape=jax.ShapeDtypeStruct((M_pad, N_pad), x.dtype),
        grid_spec=pltpu.PrefetchScalarGridSpec(
            num_scalar_prefetch=0,
            grid=grid,
            in_specs=[
                pl.BlockSpec((tm, K1), lambda i: (i, 0)),      # x row tile (full K)
                pl.BlockSpec((K1, H), lambda i: (0, 0)),       # W1 fully resident
                pl.BlockSpec((1, H), lambda i: (0, 0)),        # b1 fully resident
                pl.BlockSpec((H, N_pad), lambda i: (0, 0)),    # W2 fully resident
                pl.BlockSpec((1, N_pad), lambda i: (0, 0)),    # b2 fully resident
            ],
            out_specs=pl.BlockSpec((tm, N_pad), lambda i: (i, 0)),
        ),
        compiler_params=pltpu.CompilerParams(
            dimension_semantics=("parallel",),
            vmem_limit_bytes=48 * 1024 * 1024,
        ),
    )(x_p, w1, b1_2d, w2_p, b2_p)

    return out[:M, :N]


def init_mlp_params(key, input_dim, output_dim, hidden=4096, weight_dtype=jnp.float32):
    """Deterministic init matching nn.Linear's U(-1/sqrt(fan_in), 1/sqrt(fan_in)).
    Weights stored as (in_features, out_features); biases always f32."""
    k1, k2, k3, k4 = jax.random.split(key, 4)
    bound1 = 1.0 / (input_dim ** 0.5)
    bound2 = 1.0 / (hidden ** 0.5)
    w1 = jax.random.uniform(k1, (input_dim, hidden), jnp.float32, -bound1, bound1)
    b1 = jax.random.uniform(k2, (hidden,), jnp.float32, -bound1, bound1)
    w2 = jax.random.uniform(k3, (hidden, output_dim), jnp.float32, -bound2, bound2)
    b2 = jax.random.uniform(k4, (output_dim,), jnp.float32, -bound2, bound2)
    return (w1.astype(weight_dtype), b1, w2.astype(weight_dtype), b2)


if __name__ == "__main__":
    key = jax.random.PRNGKey(0)
    kx, kp = jax.random.split(key)

    batch, input_dim, output_dim = 8, 32, 8
    x = jax.random.normal(kx, (batch, input_dim), jnp.float32)

    # ---- f32 weights: matches the PyTorch module semantics -----------------------------
    params = init_mlp_params(kp, input_dim, output_dim)
    y = mlp_forward(x, params)
    jax.block_until_ready(y)

    w1, b1, w2, b2 = params
    ref = jnp.maximum(jnp.maximum(x @ w1 + b1, 0.0) @ w2 + b2, 0.0)
    assert y.shape == (batch, output_dim)
    assert jnp.allclose(y, ref, atol=1e-4, rtol=1e-4)

    # ---- bf16 weights: MXU-native operand path (v5e/v6e/v7x), f32 epilogue -------------
    # NOTE: hidden activation is re-cast to bf16 before layer 2 (intentional; ~1e-2 vs f32).
    w1_bf, w2_bf = w1.astype(jnp.bfloat16), w2.astype(jnp.bfloat16)
    y_bf = mlp_forward(x, (w1_bf, b1, w2_bf, b2))
    jax.block_until_ready(y_bf)

    h_ref = jnp.maximum(
        jnp.dot(x.astype(jnp.bfloat16), w1_bf, preferred_element_type=jnp.float32) + b1, 0.0
    )
    ref_bf = jnp.maximum(
        jnp.dot(h_ref.astype(jnp.bfloat16), w2_bf, preferred_element_type=jnp.float32) + b2, 0.0
    )
    assert y_bf.shape == (batch, output_dim)
    assert jnp.allclose(y_bf, ref_bf, atol=1e-2, rtol=1e-2)

    # ---- odd batch size: exercises balanced-tile / padding path ------------------------
    x_odd = jax.random.normal(kx, (37, input_dim), jnp.float32)
    y_odd = mlp_forward(x_odd, params)
    jax.block_until_ready(y_odd)
    ref_odd = jnp.maximum(jnp.maximum(x_odd @ w1 + b1, 0.0) @ w2 + b2, 0.0)
    assert y_odd.shape == (37, output_dim)
    assert jnp.allclose(y_odd, ref_odd, atol=1e-4, rtol=1e-4)

    print("KERNEL_OK")
</pallas_src>

<mosaic_0001>
module attributes {stable_mosaic.version = 11 : i64} {
  func.func @_mlp_fused_kernel(%arg0: i32, %arg1: memref<8x32xf32, #tpu.memory_space<vmem>>, %arg2: memref<32x4096xf32, #tpu.memory_space<vmem>>, %arg3: memref<1x4096xf32, #tpu.memory_space<vmem>>, %arg4: memref<4096x128xf32, #tpu.memory_space<vmem>>, %arg5: memref<1x128xf32, #tpu.memory_space<vmem>>, %arg6: memref<8x128xf32, #tpu.memory_space<vmem>>) attributes {dimension_semantics = [#tpu.dimension_semantics<parallel>], iteration_bounds = array<i64: 1>, scalar_prefetch = 0 : i64, scratch_operands = 0 : i64, tpu.core_type = #tpu.core_type<tc>, window_params = [{transform_indices = @transform_0, window_bounds = array<i64: 8, 32>}, {pipeline_mode = #tpu.pipeline_mode<synchronous>, transform_indices = @transform_1, window_bounds = array<i64: 32, 4096>}, {pipeline_mode = #tpu.pipeline_mode<synchronous>, transform_indices = @transform_2, window_bounds = array<i64: 1, 4096>}, {pipeline_mode = #tpu.pipeline_mode<synchronous>, transform_indices = @transform_3, window_bounds = array<i64: 4096, 128>}, {pipeline_mode = #tpu.pipeline_mode<synchronous>, transform_indices = @transform_4, window_bounds = array<i64: 1, 128>}, {transform_indices = @transform_5, window_bounds = array<i64: 8, 128>}]} {
    %c0 = arith.constant 0 : index
    %c0_0 = arith.constant 0 : index
    %0 = vector.load %arg1[%c0, %c0_0] : memref<8x32xf32, #tpu.memory_space<vmem>>, vector<8x32xf32>
    %c0_1 = arith.constant 0 : index
    %c0_2 = arith.constant 0 : index
    %1 = vector.load %arg2[%c0_1, %c0_2] : memref<32x4096xf32, #tpu.memory_space<vmem>>, vector<32x4096xf32>
    %cst = arith.constant dense<0.000000e+00> : vector<8x4096xf32>
    %2 = tpu.matmul %0, %1, %cst {dimension_numbers = #tpu.dot_dimension_numbers<[1], [0], [0], [1], [0, 0, 1, 1], [], []>} : vector<8x32xf32>, vector<32x4096xf32>, vector<8x4096xf32> -> vector<8x4096xf32>
    %c0_3 = arith.constant 0 : index
    %c0_4 = arith.constant 0 : index
    %3 = vector.load %arg3[%c0_3, %c0_4] : memref<1x4096xf32, #tpu.memory_space<vmem>>, vector<1x4096xf32>
    %4 = vector.broadcast %3 : vector<1x4096xf32> to vector<8x4096xf32>
    %5 = arith.addf %2, %4 : vector<8x4096xf32>
    %cst_5 = arith.constant 0.000000e+00 : f32
    %6 = vector.broadcast %cst_5 : f32 to vector<8x4096xf32>
    %7 = arith.maximumf %5, %6 : vector<8x4096xf32>
    %c0_6 = arith.constant 0 : index
    %c0_7 = arith.constant 0 : index
    %8 = vector.load %arg4[%c0_6, %c0_7] : memref<4096x128xf32, #tpu.memory_space<vmem>>, vector<4096x128xf32>
    %cst_8 = arith.constant dense<0.000000e+00> : vector<8x128xf32>
    %9 = tpu.matmul %7, %8, %cst_8 {dimension_numbers = #tpu.dot_dimension_numbers<[1], [0], [0], [1], [0, 0, 1, 1], [], []>} : vector<8x4096xf32>, vector<4096x128xf32>, vector<8x128xf32> -> vector<8x128xf32>
    %c0_9 = arith.constant 0 : index
    %c0_10 = arith.constant 0 : index
    %10 = vector.load %arg5[%c0_9, %c0_10] : memref<1x128xf32, #tpu.memory_space<vmem>>, vector<1x128xf32>
    %11 = vector.broadcast %10 : vector<1x128xf32> to vector<8x128xf32>
    %12 = arith.addf %9, %11 : vector<8x128xf32>
    %cst_11 = arith.constant 0.000000e+00 : f32
    %13 = vector.broadcast %cst_11 : f32 to vector<8x128xf32>
    %14 = arith.maximumf %12, %13 : vector<8x128xf32>
    %c0_12 = arith.constant 0 : index
    %c0_13 = arith.constant 0 : index
    %15 = vector.load %arg6[%c0_12, %c0_13] : memref<8x128xf32, #tpu.memory_space<vmem>>, vector<8x128xf32>
    tpu.vector_store %arg6[%c0_12, %c0_13], %14 {strides = array<i32>} : memref<8x128xf32, #tpu.memory_space<vmem>>, vector<8x128xf32>,
    return
  }
  func.func @transform_0(%arg0: i32) -> (i32, i32) {
    %c0_i32 = arith.constant 0 : i32
    %c0_i32_0 = arith.constant 0 : i32
    return %arg0, %c0_i32 : i32, i32
  }
  func.func @transform_1(%arg0: i32) -> (i32, i32) {
    %c0_i32 = arith.constant 0 : i32
    %c0_i32_0 = arith.constant 0 : i32
    %c0_i32_1 = arith.constant 0 : i32
    return %c0_i32, %c0_i32_0 : i32, i32
  }
  func.func @transform_2(%arg0: i32) -> (i32, i32) {
    %c0_i32 = arith.constant 0 : i32
    %c0_i32_0 = arith.constant 0 : i32
    %c0_i32_1 = arith.constant 0 : i32
    return %c0_i32, %c0_i32_0 : i32, i32
  }
  func.func @transform_3(%arg0: i32) -> (i32, i32) {
    %c0_i32 = arith.constant 0 : i32
    %c0_i32_0 = arith.constant 0 : i32
    %c0_i32_1 = arith.constant 0 : i32
    return %c0_i32, %c0_i32_0 : i32, i32
  }
  func.func @transform_4(%arg0: i32) -> (i32, i32) {
    %c0_i32 = arith.constant 0 : i32
    %c0_i32_0 = arith.constant 0 : i32
    %c0_i32_1 = arith.constant 0 : i32
    return %c0_i32, %c0_i32_0 : i32, i32
  }
  func.func @transform_5(%arg0: i32) -> (i32, i32) {
    %c0_i32 = arith.constant 0 : i32
    %c0_i32_0 = arith.constant 0 : i32
    return %arg0, %c0_i32 : i32, i32
  }
}

</mosaic_0001>

<bundles_post_ra>
// kernel: mlp_forward.1
= control target key start
LH: loop header
LB: loop body
LE: loop exit
PB: predicated region body
PF: predicated region fallthrough
CT: control target
= control target key end

     0   :  { %v4388_v7 = vmov 0.0   ;;  %vm318_vm0 = vcmask 261120   ;;  %s6596_s0 = inlined_call_operand.vmem [shape: f32[8,32], index: 0, kind: input, shape index: {}]   ;;  %s6597_s1 = inlined_call_operand.vmem [shape: f32[32,4096], index: 1, kind: input, shape index: {}]   ;;  %s6598_s2 = inlined_call_operand.vmem [shape: f32[1,4096], index: 2, kind: input, shape index: {}]   ;;  %s6599_s3 = inlined_call_operand.vmem [shape: f32[4096,128], index: 3, kind: input, shape index: {}]   ;;  %s6600_s4 = inlined_call_operand.vmem [shape: f32[1,128], index: 4, kind: input, shape index: {}]   ;;  %s6601_s5 = inlined_call_operand.hbm [shape: f32[8,128], index: 5, kind: output, shape index: {}]  }
   0x1   :  { %v23_v0 = vld [vmem:[%s6597_s1 + $0x8] sm:$0xff]  ;;  %v25_v2 = vld [vmem:[%s6597_s1 + $0x18] sm:$0xff]  ;;  %v22_v5 = vld [vmem:[%s6597_s1] sm:$0xff]  ;;  %386 = vmatprep.mubr.f32.mxu0 %v4388_v7  ;;  %457 = vmatprep.mubr.f32.mxu1 %v4388_v7 }
   0x2   :  { %v55_v1 = vld [vmem:[%s6597_s1 + $0x108] sm:$0xff]  ;;  %v57_v4 = vld [vmem:[%s6597_s1 + $0x118] sm:$0xff]  ;;  %v54_v6 = vld [vmem:[%s6597_s1 + $0x100] sm:$0xff] }
   0x3   :  { %v3722_v3 = vpack.c.bf16 %v55_v1, %v23_v0  ;;  %v3730_v8 = vpack.c.bf16 %v57_v4, %v25_v2  ;;  %v3724_v9 = vpack.c.bf16 %v54_v6, %v22_v5  ;;  %v24_v10 = vld [vmem:[%s6597_s1 + $0x10] sm:$0xff]  ;;  %v87_v12 = vld [vmem:[%s6597_s1 + $0x208] sm:$0xff]  ;;  %v89_v15 = vld [vmem:[%s6597_s1 + $0x218] sm:$0xff] }
   0x4   :  { %v56_v11 = vld [vmem:[%s6597_s1 + $0x110] sm:$0xff]  ;;  %v119_v14 = vld [vmem:[%s6597_s1 + $0x308] sm:$0xff]  ;;  %v121_v16 = vld [vmem:[%s6597_s1 + $0x318] sm:$0xff] }
   0x5   :  { %3723 = vmatprep.subr.bf16.mxu0 %v3722_v3  ;;  %v3732_v13 = vpack.c.bf16 %v56_v11, %v24_v10  ;;  %3731 = vmatprep.subr.bf16.mxu1 %v3730_v8  ;;  %v3726_v17 = vpack.c.bf16 %v119_v14, %v87_v12  ;;  %v3734_v18 = vpack.c.bf16 %v121_v16, %v89_v15  ;;  %v86_v19 = vld [vmem:[%s6597_s1 + $0x200] sm:$0xff]  ;;  %v88_v21 = vld [vmem:[%s6597_s1 + $0x210] sm:$0xff]  ;;  %v27_v24 = vld [vmem:[%s6597_s1 + $0x28] sm:$0xff] }
   0x6   :  { %3725 = vmatpush1.bf16.msra.mxu0 %v3724_v9  ;;  %v118_v20 = vld [vmem:[%s6597_s1 + $0x300] sm:$0xff]  ;;  %v120_v23 = vld [vmem:[%s6597_s1 + $0x310] sm:$0xff]  ;;  %v59_v27 = vld [vmem:[%s6597_s1 + $0x128] sm:$0xff] }
   0x7   :  { %3733 = vmatpush1.bf16.msra.mxu1 %v3732_v13  ;;  %v3728_v22 = vpack.c.bf16 %v118_v20, %v86_v19  ;;  %3727 = vmatprep.subr.bf16.mxu0 %v3726_v17  ;;  %v3736_v25 = vpack.c.bf16 %v120_v23, %v88_v21  ;;  %v4476_v26 = vld [vmem:[%s6596_s0] sm:$0xff]  ;;  %v29_v28 = vld [vmem:[%s6597_s1 + $0x38] sm:$0xff]  ;;  %v3738_v30 = vpack.c.bf16 %v59_v27, %v27_v24  ;;  %v28_v34 = vld [vmem:[%s6597_s1 + $0x30] sm:$0xff] }
   0x8   :  { %3735 = vmatprep.subr.bf16.mxu1 %v3734_v18  ;;  %v61_v29 = vld [vmem:[%s6597_s1 + $0x138] sm:$0xff]  ;;  %v26_v32 = vld [vmem:[%s6597_s1 + $0x20] sm:$0xff]  ;;  %v60_v36 = vld [vmem:[%s6597_s1 + $0x130] sm:$0xff] }
   0x9   :  { %v3746_v31 = vpack.c.bf16 %v61_v29, %v29_v28  ;;  %v58_v33 = vld [vmem:[%s6597_s1 + $0x120] sm:$0xff]  ;;  %v91_v37 = vld [vmem:[%s6597_s1 + $0x228] sm:$0xff]  ;;  %v3748_v39 = vpack.c.bf16 %v60_v36, %v28_v34  ;;  %v93_v41 = vld [vmem:[%s6597_s1 + $0x238] sm:$0xff] }
   0xa   :  { %3729 = vmatpush1.bf16.msra.mxu0 %v3728_v22  ;;  %v3740_v35 = vpack.c.bf16 %v58_v33, %v26_v32  ;;  %v123_v38 = vld [vmem:[%s6597_s1 + $0x328] sm:$0xff]  ;;  %v125_v42 = vld [vmem:[%s6597_s1 + $0x338] sm:$0xff]  ;;  %v90_v43 = vld [vmem:[%s6597_s1 + $0x220] sm:$0xff] }
   0xb   :  { %3737 = vmatpush1.bf16.msra.mxu1 %v3736_v25  ;;  %3739 = vmatprep.subr.bf16.mxu0 %v3738_v30  ;;  %v3742_v40 = vpack.c.bf16 %v123_v38, %v91_v37  ;;  %v3750_v44 = vpack.c.bf16 %v125_v42, %v93_v41  ;;  %v122_v45 = vld [vmem:[%s6597_s1 + $0x320] sm:$0xff]  ;;  %v92_v46 = vld [vmem:[%s6597_s1 + $0x230] sm:$0xff]  ;;  %v31_v48 = vld [vmem:[%s6597_s1 + $0x48] sm:$0xff] }
   0xc   :  { %3747 = vmatprep.subr.bf16.mxu1 %v3746_v31  ;;  %v124_v47 = vld [vmem:[%s6597_s1 + $0x330] sm:$0xff]  ;;  %v63_v49 = vld [vmem:[%s6597_s1 + $0x148] sm:$0xff]  ;;  %v33_v50 = vld [vmem:[%s6597_s1 + $0x58] sm:$0xff]  ;;  %v3744_v51 = vpack.c.bf16 %v122_v45, %v90_v43 }
   0xd   :  { %3145 = vmatmul.mubr.msk.f32.vlgmr.msra.gmra.mrb[0].mxu0 %vm318_vm0, %v4476_v26  ;;  %v65_v52 = vld [vmem:[%s6597_s1 + $0x158] sm:$0xff]  ;;  %v3752_v53 = vpack.c.bf16 %v124_v47, %v92_v46  ;;  %v3754_v54 = vpack.c.bf16 %v63_v49, %v31_v48  ;;  %v30_v55 = vld [vmem:[%s6597_s1 + $0x40] sm:$0xff]  ;;  %v32_v57 = vld [vmem:[%s6597_s1 + $0x50] sm:$0xff] }
   0xe   :  { %3146 = vmatmul.mubr.msk.f32.vlgmr.msra.gmra.mrb[0].mxu1 %vm318_vm0, %v4476_v26  ;;  %3741 = vmatpush1.bf16.msra.mxu0 %v3740_v35  ;;  %v62_v56 = vld [vmem:[%s6597_s1 + $0x140] sm:$0xff]  ;;  %v3762_v58 = vpack.c.bf16 %v65_v52, %v33_v50  ;;  %v64_v59 = vld [vmem:[%s6597_s1 + $0x150] sm:$0xff]  ;;  %v95_v60 = vld [vmem:[%s6597_s1 + $0x248] sm:$0xff] }
   0xf   :  { %3749 = vmatpush1.bf16.msra.mxu1 %v3748_v39  ;;  %3743 = vmatprep.subr.bf16.mxu0 %v3742_v40  ;;  %v127_v61 = vld [vmem:[%s6597_s1 + $0x348] sm:$0xff]  ;;  %v97_v62 = vld [vmem:[%s6597_s1 + $0x258] sm:$0xff]  ;;  %v3756_v0 = vpack.c.bf16 %v62_v56, %v30_v55  ;;  %v3764_v1 = vpack.c.bf16 %v64_v59, %v32_v57  ;;  %v94_v3 = vld [vmem:[%s6597_s1 + $0x240] sm:$0xff] }
  0x10   :  { %3751 = vmatprep.subr.bf16.mxu1 %v3750_v44  ;;  %528 = vmatprep.mubr.f32.mxu0 %v4388_v7  ;;  %v129_v63 = vld [vmem:[%s6597_s1 + $0x358] sm:$0xff]  ;;  %v3758_v2 = vpack.c.bf16 %v127_v61, %v95_v60  ;;  %v126_v4 = vld [vmem:[%s6597_s1 + $0x340] sm:$0xff]  ;;  %v96_v5 = vld [vmem:[%s6597_s1 + $0x250] sm:$0xff] }
  0x11   :  { %599 = vmatprep.mubr.f32.mxu1 %v4388_v7  ;;  %v3766_v6 = vpack.c.bf16 %v129_v63, %v97_v62  ;;  %v128_v8 = vld [vmem:[%s6597_s1 + $0x350] sm:$0xff]  ;;  %v35_v9 = vld [vmem:[%s6597_s1 + $0x68] sm:$0xff]  ;;  %v37_v11 = vld [vmem:[%s6597_s1 + $0x78] sm:$0xff]  ;;  %v3760_v13 = vpack.c.bf16 %v126_v4, %v94_v3 }
  0x12   :  { %3745 = vmatpush1.bf16.msra.mxu0 %v3744_v51  ;;  %v67_v10 = vld [vmem:[%s6597_s1 + $0x168] sm:$0xff]  ;;  %v69_v12 = vld [vmem:[%s6597_s1 + $0x178] sm:$0xff]  ;;  %v3768_v14 = vpack.c.bf16 %v128_v8, %v96_v5  ;;  %v34_v16 = vld [vmem:[%s6597_s1 + $0x60] sm:$0xff] }
  0x13   :  { %3753 = vmatpush1.bf16.msra.mxu1 %v3752_v53  ;;  %3755 = vmatprep.subr.bf16.mxu0 %v3754_v54  ;;  %v3770_v15 = vpack.c.bf16 %v67_v10, %v35_v9  ;;  %v66_v17 = vld [vmem:[%s6597_s1 + $0x160] sm:$0xff]  ;;  %v36_v18 = vld [vmem:[%s6597_s1 + $0x70] sm:$0xff]  ;;  %v3778_v19 = vpack.c.bf16 %v69_v12, %v37_v11  ;;  %v99_v21 = vld [vmem:[%s6597_s1 + $0x268] sm:$0xff] }
  0x14   :  { %3763 = vmatprep.subr.bf16.mxu1 %v3762_v58  ;;  %v68_v20 = vld [vmem:[%s6597_s1 + $0x170] sm:$0xff]  ;;  %v131_v22 = vld [vmem:[%s6597_s1 + $0x368] sm:$0xff]  ;;  %v101_v23 = vld [vmem:[%s6597_s1 + $0x278] sm:$0xff]  ;;  %v3772_v25 = vpack.c.bf16 %v66_v17, %v34_v16 }
  0x15   :  { %3147 = vmatmul.mubr.msk.f32.vlgmr.msra.gmra.mrb[2].mxu0 %vm318_vm0, %v4476_v26  ;;  %v133_v24 = vld [vmem:[%s6597_s1 + $0x378] sm:$0xff]  ;;  %v3780_v27 = vpack.c.bf16 %v68_v20, %v36_v18  ;;  %v3774_v28 = vpack.c.bf16 %v131_v22, %v99_v21  ;;  %v98_v29 = vld [vmem:[%s6597_s1 + $0x260] sm:$0xff]  ;;  %v100_v31 = vld [vmem:[%s6597_s1 + $0x270] sm:$0xff] }
  0x16   :  { %3148 = vmatmul.mubr.msk.f32.vlgmr.msra.gmra.mrb[2].mxu1 %vm318_vm0, %v4476_v26  ;;  %3757 = vmatpush1.bf16.msra.mxu0 %v3756_v0  ;;  %v130_v30 = vld [vmem:[%s6597_s1 + $0x360] sm:$0xff]  ;;  %v3782_v32 = vpack.c.bf16 %v133_v24, %v101_v23  ;;  %v132_v33 = vld [vmem:[%s6597_s1 + $0x370] sm:$0xff]  ;;  %v39_v34 = vld [vmem:[%s6597_s1 + $0x88] sm:$0xff] }
  0x17   :  { %3765 = vmatpush1.bf16.msra.mxu1 %v3764_v1  ;;  %3759 = vmatprep.subr.bf16.mxu0 %v3758_v2  ;;  %v71_v35 = vld [vmem:[%s6597_s1 + $0x188] sm:$0xff]  ;;  %v41_v36 = vld [vmem:[%s6597_s1 + $0x98] sm:$0xff]  ;;  %v3776_v38 = vpack.c.bf16 %v130_v30, %v98_v29  ;;  %v3784_v39 = vpack.c.bf16 %v132_v33, %v100_v31  ;;  %v38_v41 = vld [vmem:[%s6597_s1 + $0x80] sm:$0xff] }
  0x18   :  { %3767 = vmatprep.subr.bf16.mxu1 %v3766_v6  ;;  %670 = vmatprep.mubr.f32.mxu0 %v4388_v7  ;;  %v73_v37 = vld [vmem:[%s6597_s1 + $0x198] sm:$0xff]  ;;  %v3786_v40 = vpack.c.bf16 %v71_v35, %v39_v34  ;;  %v70_v42 = vld [vmem:[%s6597_s1 + $0x180] sm:$0xff]  ;;  %v40_v43 = vld [vmem:[%s6597_s1 + $0x90] sm:$0xff] }
  0x19   :  { %741 = vmatprep.mubr.f32.mxu1 %v4388_v7  ;;  %v3794_v44 = vpack.c.bf16 %v73_v37, %v41_v36  ;;  %v72_v45 = vld [vmem:[%s6597_s1 + $0x190] sm:$0xff]  ;;  %v103_v46 = vld [vmem:[%s6597_s1 + $0x288] sm:$0xff]  ;;  %v105_v48 = vld [vmem:[%s6597_s1 + $0x298] sm:$0xff]  ;;  %v3788_v50 = vpack.c.bf16 %v70_v42, %v38_v41 }
  0x1a   :  { %3761 = vmatpush1.bf16.msra.mxu0 %v3760_v13  ;;  %v135_v47 = vld [vmem:[%s6597_s1 + $0x388] sm:$0xff]  ;;  %v137_v49 = vld [vmem:[%s6597_s1 + $0x398] sm:$0xff]  ;;  %v3796_v51 = vpack.c.bf16 %v72_v45, %v40_v43  ;;  %v102_v53 = vld [vmem:[%s6597_s1 + $0x280] sm:$0xff] }
  0x1b   :  { %3769 = vmatpush1.bf16.msra.mxu1 %v3768_v14  ;;  %3771 = vmatprep.subr.bf16.mxu0 %v3770_v15  ;;  %v3790_v52 = vpack.c.bf16 %v135_v47, %v103_v46  ;;  %v134_v54 = vld [vmem:[%s6597_s1 + $0x380] sm:$0xff]  ;;  %v104_v55 = vld [vmem:[%s6597_s1 + $0x290] sm:$0xff]  ;;  %v3798_v56 = vpack.c.bf16 %v137_v49, %v105_v48  ;;  %v43_v58 = vld [vmem:[%s6597_s1 + $0xa8] sm:$0xff] }
  0x1c   :  { %3779 = vmatprep.subr.bf16.mxu1 %v3778_v19  ;;  %v136_v57 = vld [vmem:[%s6597_s1 + $0x390] sm:$0xff]  ;;  %v75_v59 = vld [vmem:[%s6597_s1 + $0x1a8] sm:$0xff]  ;;  %v45_v60 = vld [vmem:[%s6597_s1 + $0xb8] sm:$0xff]  ;;  %v3792_v62 = vpack.c.bf16 %v134_v54, %v102_v53 }
  0x1d   :  { %3149 = vmatmul.mubr.msk.f32.vlgmr.msra.gmra.mrb[4].mxu0 %vm318_vm0, %v4476_v26  ;;  %v77_v61 = vld [vmem:[%s6597_s1 + $0x1b8] sm:$0xff]  ;;  %v3800_v63 = vpack.c.bf16 %v136_v57, %v104_v55  ;;  %v3802_v0 = vpack.c.bf16 %v75_v59, %v43_v58  ;;  %v42_v1 = vld [vmem:[%s6597_s1 + $0xa0] sm:$0xff]  ;;  %v44_v3 = vld [vmem:[%s6597_s1 + $0xb0] sm:$0xff] }
  0x1e   :  { %3150 = vmatmul.mubr.msk.f32.vlgmr.msra.gmra.mrb[4].mxu1 %vm318_vm0, %v4476_v26  ;;  %3773 = vmatpush1.bf16.msra.mxu0 %v3772_v25  ;;  %v74_v2 = vld [vmem:[%s6597_s1 + $0x1a0] sm:$0xff]  ;;  %v3810_v4 = vpack.c.bf16 %v77_v61, %v45_v60  ;;  %v76_v5 = vld [vmem:[%s6597_s1 + $0x1b0] sm:$0xff]  ;;  %v107_v6 = vld [vmem:[%s6597_s1 + $0x2a8] sm:$0xff] }
  0x1f   :  { %3781 = vmatpush1.bf16.msra.mxu1 %v3780_v27  ;;  %3775 = vmatprep.subr.bf16.mxu0 %v3774_v28  ;;  %v139_v8 = vld [vmem:[%s6597_s1 + $0x3a8] sm:$0xff]  ;;  %v109_v9 = vld [vmem:[%s6597_s1 + $0x2b8] sm:$0xff]  ;;  %v3804_v11 = vpack.c.bf16 %v74_v2, %v42_v1  ;;  %v3812_v12 = vpack.c.bf16 %v76_v5, %v44_v3  ;;  %v106_v14 = vld [vmem:[%s6597_s1 + $0x2a0] sm:$0xff] }
  0x20   :  { %3783 = vmatprep.subr.bf16.mxu1 %v3782_v32  ;;  %812 = vmatprep.mubr.f32.mxu0 %v4388_v7  ;;  %v141_v10 = vld [vmem:[%s6597_s1 + $0x3b8] sm:$0xff]  ;;  %v3806_v13 = vpack.c.bf16 %v139_v8, %v107_v6  ;;  %v138_v15 = vld [vmem:[%s6597_s1 + $0x3a0] sm:$0xff]  ;;  %v108_v16 = vld [vmem:[%s6597_s1 + $0x2b0] sm:$0xff] }
  0x21   :  { %883 = vmatprep.mubr.f32.mxu1 %v4388_v7  ;;  %v3814_v17 = vpack.c.bf16 %v141_v10, %v109_v9  ;;  %v140_v18 = vld [vmem:[%s6597_s1 + $0x3b0] sm:$0xff]  ;;  %v47_v19 = vld [vmem:[%s6597_s1 + $0xc8] sm:$0xff]  ;;  %v49_v21 = vld [vmem:[%s6597_s1 + $0xd8] sm:$0xff]  ;;  %v3808_v23 = vpack.c.bf16 %v138_v15, %v106_v14 }
  0x22   :  { %3777 = vmatpush1.bf16.msra.mxu0 %v3776_v38  ;;  %v79_v20 = vld [vmem:[%s6597_s1 + $0x1c8] sm:$0xff]  ;;  %v81_v22 = vld [vmem:[%s6597_s1 + $0x1d8] sm:$0xff]  ;;  %v3816_v24 = vpack.c.bf16 %v140_v18, %v108_v16  ;;  %v46_v27 = vld [vmem:[%s6597_s1 + $0xc0] sm:$0xff] }
  0x23   :  { %3785 = vmatpush1.bf16.msra.mxu1 %v3784_v39  ;;  %3787 = vmatprep.subr.bf16.mxu0 %v3786_v40  ;;  %v3818_v25 = vpack.c.bf16 %v79_v20, %v47_v19  ;;  %v78_v28 = vld [vmem:[%s6597_s1 + $0x1c0] sm:$0xff]  ;;  %v48_v29 = vld [vmem:[%s6597_s1 + $0xd0] sm:$0xff]  ;;  %v3826_v30 = vpack.c.bf16 %v81_v22, %v49_v21  ;;  %v111_v32 = vld [vmem:[%s6597_s1 + $0x2c8] sm:$0xff] }
  0x24   :  { %3795 = vmatprep.subr.bf16.mxu1 %v3794_v44  ;;  %v80_v31 = vld [vmem:[%s6597_s1 + $0x1d0] sm:$0xff]  ;;  %v143_v33 = vld [vmem:[%s6597_s1 + $0x3c8] sm:$0xff]  ;;  %v113_v34 = vld [vmem:[%s6597_s1 + $0x2d8] sm:$0xff]  ;;  %v3820_v36 = vpack.c.bf16 %v78_v28, %v46_v27 }
  0x25   :  { %3151 = vmatmul.mubr.msk.f32.vlgmr.msra.gmra.mrb[6].mxu0 %vm318_vm0, %v4476_v26  ;;  %v145_v35 = vld [vmem:[%s6597_s1 + $0x3d8] sm:$0xff]  ;;  %v3828_v37 = vpack.c.bf16 %v80_v31, %v48_v29  ;;  %v3822_v38 = vpack.c.bf16 %v143_v33, %v111_v32  ;;  %v110_v39 = vld [vmem:[%s6597_s1 + $0x2c0] sm:$0xff]  ;;  %v112_v41 = vld [vmem:[%s6597_s1 + $0x2d0] sm:$0xff] }
  0x26   :  { %3152 = vmatmul.mubr.msk.f32.vlgmr.msra.gmra.mrb[6].mxu1 %vm318_vm0, %v4476_v26  ;;  %3789 = vmatpush1.bf16.msra.mxu0 %v3788_v50  ;;  %v142_v40 = vld [vmem:[%s6597_s1 + $0x3c0] sm:$0xff]  ;;  %v3830_v42 = vpack.c.bf16 %v145_v35, %v113_v34  ;;  %v144_v43 = vld [vmem:[%s6597_s1 + $0x3d0] sm:$0xff]  ;;  %v51_v44 = vld [vmem:[%s6597_s1 + $0xe8] sm:$0xff] }
  0x27   :  { %3797 = vmatpush1.bf16.msra.mxu1 %v3796_v51  ;;  %3791 = vmatprep.subr.bf16.mxu0 %v3790_v52  ;;  %v83_v45 = vld [vmem:[%s6597_s1 + $0x1e8] sm:$0xff]  ;;  %v53_v46 = vld [vmem:[%s6597_s1 + $0xf8] sm:$0xff]  ;;  %v3824_v48 = vpack.c.bf16 %v142_v40, %v110_v39  ;;  %v3832_v49 = vpack.c.bf16 %v144_v43, %v112_v41  ;;  %v50_v51 = vld [vmem:[%s6597_s1 + $0xe0] sm:$0xff] }
  0x28   :  { %3799 = vmatprep.subr.bf16.mxu1 %v3798_v56  ;;  %954 = vmatprep.mubr.f32.mxu0 %v4388_v7  ;;  %v85_v47 = vld [vmem:[%s6597_s1 + $0x1f8] sm:$0xff]  ;;  %v3834_v50 = vpack.c.bf16 %v83_v45, %v51_v44  ;;  %v82_v52 = vld [vmem:[%s6597_s1 + $0x1e0] sm:$0xff]  ;;  %v52_v53 = vld [vmem:[%s6597_s1 + $0xf0] sm:$0xff] }
  0x29   :  { %1025 = vmatprep.mubr.f32.mxu1 %v4388_v7  ;;  %v3842_v54 = vpack.c.bf16 %v85_v47, %v53_v46  ;;  %v84_v55 = vld [vmem:[%s6597_s1 + $0x1f0] sm:$0xff]  ;;  %v115_v56 = vld [vmem:[%s6597_s1 + $0x2e8] sm:$0xff]  ;;  %v117_v58 = vld [vmem:[%s6597_s1 + $0x2f8] sm:$0xff]  ;;  %v3836_v60 = vpack.c.bf16 %v82_v52, %v50_v51 }
  0x2a   :  { %3793 = vmatpush1.bf16.msra.mxu0 %v3792_v62  ;;  %v147_v57 = vld [vmem:[%s6597_s1 + $0x3e8] sm:$0xff]  ;;  %v149_v59 = vld [vmem:[%s6597_s1 + $0x3f8] sm:$0xff]  ;;  %v3844_v61 = vpack.c.bf16 %v84_v55, %v52_v53  ;;  %v116_v1 = vld [vmem:[%s6597_s1 + $0x2f0] sm:$0xff] }
  0x2b   :  { %3801 = vmatpush1.bf16.msra.mxu1 %v3800_v63  ;;  %3803 = vmatprep.subr.bf16.mxu0 %v3802_v0  ;;  %v3838_v62 = vpack.c.bf16 %v147_v57, %v115_v56  ;;  %v114_v63 = vld [vmem:[%s6597_s1 + $0x2e0] sm:$0xff]  ;;  %v3846_v2 = vpack.c.bf16 %v149_v59, %v117_v58  ;;  %v148_v3 = vld [vmem:[%s6597_s1 + $0x3f0] sm:$0xff]  ;;  %v1507_v5 = vld [vmem:[%s6599_s3 + $0x88] sm:$0xff] }
  0x2c   :  { %3811 = vmatprep.subr.bf16.mxu1 %v3810_v4  ;;  %v146_v0 = vld [vmem:[%s6597_s1 + $0x3e0] sm:$0xff]  ;;  %v1539_v8 = vld [vmem:[%s6599_s3 + $0x188] sm:$0xff]  ;;  %v1509_v18 = vld [vmem:[%s6599_s3 + $0x98] sm:$0xff] }
  0x2d   :  { %3153 = vmatmul.mubr.msk.f32.vlgmr.msra.gmra.mrb[8].mxu0 %vm318_vm0, %v4476_v26  ;;  %v1506_v4 = vld [vmem:[%s6599_s3 + $0x80] sm:$0xff]  ;;  %v3840_v9 = vpack.c.bf16 %v146_v0, %v114_v63  ;;  %v1523_v15 = vld [vmem:[%s6599_s3 + $0x108] sm:$0xff] }
  0x2e   :  { %3154 = vmatmul.mubr.msk.f32.vlgmr.msra.gmra.mrb[8].mxu1 %vm318_vm0, %v4476_v26  ;;  %3805 = vmatpush1.bf16.msra.mxu0 %v3804_v11  ;;  %v1538_v6 = vld [vmem:[%s6599_s3 + $0x180] sm:$0xff]  ;;  %v3848_v11 = vpack.c.bf16 %v148_v3, %v116_v1 }
  0x2f   :  { %3813 = vmatpush1.bf16.msra.mxu1 %v3812_v12  ;;  %3807 = vmatprep.subr.bf16.mxu0 %v3806_v13  ;;  %v1490_v10 = vld [vmem:[%s6599_s3] sm:$0xff]  ;;  %v3850_v12 = vpack.c.bf16 %v1507_v5, %v1506_v4  ;;  %v1491_v13 = vld [vmem:[%s6599_s3 + $0x8] sm:$0xff]  ;;  %v3882_v16 = vpack.c.bf16 %v1539_v8, %v1538_v6 }
  0x30   :  { %3815 = vmatprep.subr.bf16.mxu1 %v3814_v17  ;;  %1096 = vmatprep.mubr.f32.mxu0 %v4388_v7  ;;  %v1522_v14 = vld [vmem:[%s6599_s3 + $0x100] sm:$0xff]  ;;  %v1508_v17 = vld [vmem:[%s6599_s3 + $0x90] sm:$0xff] }
  0x31   :  { %1167 = vmatprep.mubr.f32.mxu1 %v4388_v7 }
  0x32   :  { %3809 = vmatpush1.bf16.msra.mxu0 %v3808_v23 }
  0x33   :  { %3817 = vmatpush1.bf16.msra.mxu1 %v3816_v24  ;;  %3819 = vmatprep.subr.bf16.mxu0 %v3818_v25 }
  0x34   :  { %3827 = vmatprep.subr.bf16.mxu1 %v3826_v30 }
  0x35   :  { %3155 = vmatmul.mubr.msk.f32.vlgmr.msra.gmra.mrb[10].mxu0 %vm318_vm0, %v4476_v26 }
  0x36   :  { %3156 = vmatmul.mubr.msk.f32.vlgmr.msra.gmra.mrb[10].mxu1 %vm318_vm0, %v4476_v26  ;;  %3821 = vmatpush1.bf16.msra.mxu0 %v3820_v36 }
  0x37   :  { %3829 = vmatpush1.bf16.msra.mxu1 %v3828_v37  ;;  %3823 = vmatprep.subr.bf16.mxu0 %v3822_v38 }
  0x38   :  { %3831 = vmatprep.subr.bf16.mxu1 %v3830_v42  ;;  %1238 = vmatprep.mubr.f32.mxu0 %v4388_v7 }
  0x39   :  { %1309 = vmatprep.mubr.f32.mxu1 %v4388_v7 }
  0x3a   :  { %3825 = vmatpush1.bf16.msra.mxu0 %v3824_v48 }
  0x3b   :  { %3833 = vmatpush1.bf16.msra.mxu1 %v3832_v49  ;;  %3835 = vmatprep.subr.bf16.mxu0 %v3834_v50 }
  0x3c   :  { %3843 = vmatprep.subr.bf16.mxu1 %v3842_v54 }
  0x3d   :  { %3157 = vmatmul.mubr.msk.f32.vlgmr.msra.gmra.mrb[12].mxu0 %vm318_vm0, %v4476_v26 }
  0x3e   :  { %3158 = vmatmul.mubr.msk.f32.vlgmr.msra.gmra.mrb[12].mxu1 %vm318_vm0, %v4476_v26  ;;  %3837 = vmatpush1.bf16.msra.mxu0 %v3836_v60 }
  0x3f   :  { %3845 = vmatpush1.bf16.msra.mxu1 %v3844_v61  ;;  %3839 = vmatprep.subr.bf16.mxu0 %v3838_v62 }
  0x40   :  { %3847 = vmatprep.subr.bf16.mxu1 %v3846_v2  ;;  %1380 = vmatprep.mubr.f32.mxu0 %v4388_v7 }
  0x41   :  { %10 = vsyncpa [#allocation3], 0  ;;  %1451 = vmatprep.mubr.f32.mxu1 %v4388_v7  ;;  %v1540_v19 = vld [vmem:[%s6599_s3 + $0x190] sm:$0xff]  ;;  %v1541_v20 = vld [vmem:[%s6599_s3 + $0x198] sm:$0xff]  ;;  %v3852_v21 = vpack.c.bf16 %v1491_v13, %v1490_v10  ;;  %v3884_v22 = vpack.c.bf16 %v1523_v15, %v1522_v14  ;;  %v3854_v23 = vpack.c.bf16 %v1509_v18, %v1508_v17 }
  0x42   :  { %3841 = vmatpush1.bf16.msra.mxu0 %v3840_v9  ;;  %v1492_v24 = vld [vmem:[%s6599_s3 + $0x10] sm:$0xff]  ;;  %v1493_v7 = vld [vmem:[%s6599_s3 + $0x18] sm:$0xff]  ;;  %v3886_v27 = vpack.c.bf16 %v1541_v20, %v1540_v19  ;;  %v1510_v29 = vld [vmem:[%s6599_s3 + $0xa0] sm:$0xff] }
  0x43   :  { %3849 = vmatpush1.bf16.msra.mxu1 %v3848_v11  ;;  %3851 = vmatprep.subr.bf16.mxu0 %v3850_v12  ;;  %v1524_v25 = vld [vmem:[%s6599_s3 + $0x110] sm:$0xff]  ;;  %v1525_v28 = vld [vmem:[%s6599_s3 + $0x118] sm:$0xff]  ;;  %v1511_v30 = vld [vmem:[%s6599_s3 + $0xa8] sm:$0xff]  ;;  %v3856_v33 = vpack.c.bf16 %v1493_v7, %v1492_v24 }
  0x44   :  { %3883 = vmatprep.subr.bf16.mxu1 %v3882_v16  ;;  %v1542_v31 = vld [vmem:[%s6599_s3 + $0x1a0] sm:$0xff]  ;;  %v1543_v32 = vld [vmem:[%s6599_s3 + $0x1a8] sm:$0xff]  ;;  %v3888_v34 = vpack.c.bf16 %v1525_v28, %v1524_v25  ;;  %v3858_v35 = vpack.c.bf16 %v1511_v30, %v1510_v29  ;;  %v1512_v40 = vld [vmem:[%s6599_s3 + $0xb0] sm:$0xff] }
  0x45   :  { %3159 = vmatmul.mubr.msk.f32.vlgmr.msra.gmra.mrb[14].mxu0 %vm318_vm0, %v4476_v26  ;;  %v1494_v36 = vld [vmem:[%s6599_s3 + $0x20] sm:$0xff]  ;;  %v1495_v37 = vld [vmem:[%s6599_s3 + $0x28] sm:$0xff]  ;;  %v1513_v41 = vld [vmem:[%s6599_s3 + $0xb8] sm:$0xff] }
  0x46   :  { %3160 = vmatmul.mubr.msk.f32.vlgmr.msra.gmra.mrb[14].mxu1 %vm318_vm0, %v4476_v26  ;;  %3853 = vmatpush3.bf16.msra.mxu0 %v3852_v21  ;;  %v1526_v38 = vld [vmem:[%s6599_s3 + $0x120] sm:$0xff]  ;;  %v3890_v26 = vpack.c.bf16 %v1543_v32, %v1542_v31  ;;  %v1527_v39 = vld [vmem:[%s6599_s3 + $0x128] sm:$0xff]  ;;  %v1544_v42 = vld [vmem:[%s6599_s3 + $0x1b0] sm:$0xff]  ;;  %v3860_v44 = vpack.c.bf16 %v1495_v37, %v1494_v36  ;;  %v3862_v46 = vpack.c.bf16 %v1513_v41, %v1512_v40 }
  0x47   :  { %3885 = vmatpush3.bf16.msra.mxu1 %v3884_v22  ;;  %3855 = vmatprep.subr.bf16.mxu0 %v3854_v23  ;;  %v1545_v43 = vld [vmem:[%s6599_s3 + $0x1b8] sm:$0xff]  ;;  %v3892_v45 = vpack.c.bf16 %v1527_v39, %v1526_v38  ;;  %v1496_v47 = vld [vmem:[%s6599_s3 + $0x30] sm:$0xff]  ;;  %v1514_v52 = vld [vmem:[%s6599_s3 + $0xc0] sm:$0xff] }
  0x48   :  { %3887 = vmatprep.subr.bf16.mxu1 %v3886_v27  ;;  %v1497_v48 = vld [vmem:[%s6599_s3 + $0x38] sm:$0xff]  ;;  %v1528_v49 = vld [vmem:[%s6599_s3 + $0x130] sm:$0xff]  ;;  %v3894_v50 = vpack.c.bf16 %v1545_v43, %v1544_v42  ;;  %v1515_v53 = vld [vmem:[%s6599_s3 + $0xc8] sm:$0xff] }
  0x49   :  { %v1529_v51 = vld [vmem:[%s6599_s3 + $0x138] sm:$0xff]  ;;  %v1546_v54 = vld [vmem:[%s6599_s3 + $0x1c0] sm:$0xff]  ;;  %v1547_v55 = vld [vmem:[%s6599_s3 + $0x1c8] sm:$0xff]  ;;  %v3864_v56 = vpack.c.bf16 %v1497_v48, %v1496_v47  ;;  %v3866_v58 = vpack.c.bf16 %v1515_v53, %v1514_v52 }
  0x4a   :  { %3857 = vmatpush3.bf16.msra.mxu0 %v3856_v33  ;;  %v3896_v57 = vpack.c.bf16 %v1529_v51, %v1528_v49  ;;  %v1498_v59 = vld [vmem:[%s6599_s3 + $0x40] sm:$0xff]  ;;  %v1499_v60 = vld [vmem:[%s6599_s3 + $0x48] sm:$0xff]  ;;  %v3898_v62 = vpack.c.bf16 %v1547_v55, %v1546_v54  ;;  %v1516_v0 = vld [vmem:[%s6599_s3 + $0xd0] sm:$0xff] }
  0x4b   :  { %3889 = vmatpush3.bf16.msra.mxu1 %v3888_v34  ;;  %3859 = vmatprep.subr.bf16.mxu0 %v3858_v35  ;;  %v1530_v61 = vld [vmem:[%s6599_s3 + $0x140] sm:$0xff]  ;;  %v1531_v63 = vld [vmem:[%s6599_s3 + $0x148] sm:$0xff]  ;;  %v1517_v1 = vld [vmem:[%s6599_s3 + $0xd8] sm:$0xff]  ;;  %v3868_v4 = vpack.c.bf16 %v1499_v60, %v1498_v59 }
  0x4c   :  { %3891 = vmatprep.subr.bf16.mxu1 %v3890_v26  ;;  %v1548_v2 = vld [vmem:[%s6599_s3 + $0x1d0] sm:$0xff]  ;;  %v1549_v3 = vld [vmem:[%s6599_s3 + $0x1d8] sm:$0xff]  ;;  %v3900_v5 = vpack.c.bf16 %v1531_v63, %v1530_v61  ;;  %v3870_v6 = vpack.c.bf16 %v1517_v1, %v1516_v0  ;;  %v1518_v13 = vld [vmem:[%s6599_s3 + $0xe0] sm:$0xff] }
  0x4d   :  { %v1500_v8 = vld [vmem:[%s6599_s3 + $0x50] sm:$0xff]  ;;  %v1501_v9 = vld [vmem:[%s6599_s3 + $0x58] sm:$0xff]  ;;  %v3902_v11 = vpack.c.bf16 %v1549_v3, %v1548_v2  ;;  %v1519_v14 = vld [vmem:[%s6599_s3 + $0xe8] sm:$0xff] }
  0x4e   :  { %3861 = vmatpush3.bf16.msra.mxu0 %v3860_v44  ;;  %v1532_v10 = vld [vmem:[%s6599_s3 + $0x150] sm:$0xff]  ;;  %v1533_v12 = vld [vmem:[%s6599_s3 + $0x158] sm:$0xff]  ;;  %v1550_v15 = vld [vmem:[%s6599_s3 + $0x1e0] sm:$0xff]  ;;  %v3872_v17 = vpack.c.bf16 %v1501_v9, %v1500_v8  ;;  %v3874_v19 = vpack.c.bf16 %v1519_v14, %v1518_v13  ;;  %v158_v44 = vlaneseq }
  0x4f   :  { %3893 = vmatpush3.bf16.msra.mxu1 %v3892_v45  ;;  %3863 = vmatprep.subr.bf16.mxu0 %v3862_v46  ;;  %v1551_v16 = vld [vmem:[%s6599_s3 + $0x1e8] sm:$0xff]  ;;  %v3904_v18 = vpack.c.bf16 %v1533_v12, %v1532_v10  ;;  %v1502_v20 = vld [vmem:[%s6599_s3 + $0x60] sm:$0xff]  ;;  %v1520_v27 = vld [vmem:[%s6599_s3 + $0xf0] sm:$0xff] }
  0x50   :  { %3895 = vmatprep.subr.bf16.mxu1 %v3894_v50  ;;  %v1503_v21 = vld [vmem:[%s6599_s3 + $0x68] sm:$0xff]  ;;  %v3906_v22 = vpack.c.bf16 %v1551_v16, %v1550_v15  ;;  %v1534_v23 = vld [vmem:[%s6599_s3 + $0x160] sm:$0xff]  ;;  %v1521_v28 = vld [vmem:[%s6599_s3 + $0xf8] sm:$0xff]  ;;  %v5061_v45 = vshrl.u32 %v158_v44, 7 }
  0x51   :  { %v1535_v24 = vld [vmem:[%s6599_s3 + $0x168] sm:$0xff]  ;;  %v3876_v7 = vpack.c.bf16 %v1503_v21, %v1502_v20  ;;  %v1552_v29 = vld [vmem:[%s6599_s3 + $0x1f0] sm:$0xff]  ;;  %v3878_v30 = vpack.c.bf16 %v1521_v28, %v1520_v27  ;;  %v1553_v31 = vld [vmem:[%s6599_s3 + $0x1f8] sm:$0xff] }
  0x52   :  { %3865 = vmatpush3.bf16.msra.mxu0 %v3864_v56  ;;  %v3908_v25 = vpack.c.bf16 %v1535_v24, %v1534_v23  ;;  %v1504_v32 = vld [vmem:[%s6599_s3 + $0x70] sm:$0xff]  ;;  %v1505_v33 = vld [vmem:[%s6599_s3 + $0x78] sm:$0xff]  ;;  %v3910_v34 = vpack.c.bf16 %v1553_v31, %v1552_v29  ;;  %v1570_v26 = vld [vmem:[%s6599_s3 + $0x280] sm:$0xff]  ;;  %v5064_v46 = vsub.s32 0, %v5061_v45  ;;  %v5072_v48 = vsub.s32 2, %v5061_v45 }
  0x53   :  { %3897 = vmatpush3.bf16.msra.mxu1 %v3896_v57  ;;  %3867 = vmatprep.subr.bf16.mxu0 %v3866_v58  ;;  %v3880_v35 = vpack.c.bf16 %v1505_v33, %v1504_v32  ;;  %v1536_v36 = vld [vmem:[%s6599_s3 + $0x170] sm:$0xff]  ;;  %v1537_v37 = vld [vmem:[%s6599_s3 + $0x178] sm:$0xff]  ;;  %v1571_v39 = vld [vmem:[%s6599_s3 + $0x288] sm:$0xff]  ;;  %v5075_v49 = vsub.s32 1, %v5061_v45  ;;  %v5078_v50 = vsub.s32 3, %v5061_v45  ;;  %v5116_v9 = vsub.s32 7, %v5061_v45 }
  0x54   :  { %3899 = vmatprep.subr.bf16.mxu1 %v3898_v62  ;;  %v3912_v38 = vpack.c.bf16 %v1537_v37, %v1536_v36  ;;  %v1602_v40 = vld [vmem:[%s6599_s3 + $0x380] sm:$0xff]  ;;  %v3914_v41 = vpack.c.bf16 %v1571_v39, %v1570_v26  ;;  %v1603_v42 = vld [vmem:[%s6599_s3 + $0x388] sm:$0xff]  ;;  %v1572_v2 = vld [vmem:[%s6599_s3 + $0x290] sm:$0xff] }
  0x55   :  { %v3946_v43 = vpack.c.bf16 %v1603_v42, %v1602_v40  ;;  %v5069_v47 = vld [vmem:[%s6598_s2] sm:$0xff]  ;;  %v1555_v60 = vld [vmem:[%s6599_s3 + $0x208] sm:$0xff]  ;;  %v1573_v3 = vld [vmem:[%s6599_s3 + $0x298] sm:$0xff] }
  0x56   :  { %3869 = vmatpush3.bf16.msra.mxu0 %v3868_v4  ;;  %v161_v51 = vrot.slane %v5069_v47, %v5064_v46  ;;  %v169_v52 = vrot.slane %v5069_v47, %v5072_v48  ;;  %v165_v53 = vrot.slane %v5069_v47, %v5075_v49  ;;  %v173_v54 = vrot.slane %v5069_v47, %v5078_v50  ;;  %v1554_v59 = vld [vmem:[%s6599_s3 + $0x200] sm:$0xff]  ;;  %v1587_v1 = vld [vmem:[%s6599_s3 + $0x308] sm:$0xff]  ;;  %v1605_v8 = vld [vmem:[%s6599_s3 + $0x398] sm:$0xff] }
  0x57   :  { %3901 = vmatpush3.bf16.msra.mxu1 %v3900_v5  ;;  %3871 = vmatprep.subr.bf16.mxu0 %v3870_v6  ;;  %v1586_v61 = vld [vmem:[%s6599_s3 + $0x300] sm:$0xff]  ;;  %v5107_v4 = vsub.s32 5, %v5061_v45  ;;  %v1604_v6 = vld [vmem:[%s6599_s3 + $0x390] sm:$0xff]  ;;  %v3916_v12 = vpack.c.bf16 %v1555_v60, %v1554_v59  ;;  %v3918_v16 = vpack.c.bf16 %v1573_v3, %v1572_v2  ;;  %v1589_v21 = vld [vmem:[%s6599_s3 + $0x318] sm:$0xff]  ;;  %v189_v27 = vrot.slane %v5069_v47, %v5116_v9 }
  0x58   :  { %3903 = vmatprep.subr.bf16.mxu1 %v3902_v11  ;;  %v3948_v15 = vpack.c.bf16 %v1587_v1, %v1586_v61  ;;  %v3950_v20 = vpack.c.bf16 %v1605_v8, %v1604_v6  ;;  %v1575_v23 = vld [vmem:[%s6599_s3 + $0x2a8] sm:$0xff]  ;;  %v1558_v32 = vld [vmem:[%s6599_s3 + $0x220] sm:$0xff]  ;;  %v1576_v26 = vld [vmem:[%s6599_s3 + $0x2b0] sm:$0xff] }
  0x59   :  { %v181_v24 = vrot.slane %v5069_v47, %v5107_v4  ;;  %v1559_v33 = vld [vmem:[%s6599_s3 + $0x228] sm:$0xff]  ;;  %v1577_v39 = vld [vmem:[%s6599_s3 + $0x2b8] sm:$0xff]  ;;  %v1608_v42 = vld [vmem:[%s6599_s3 + $0x3b0] sm:$0xff] }
  0x5a   :  { %3873 = vmatpush3.bf16.msra.mxu0 %v3872_v17  ;;  %v1556_v17 = vld [vmem:[%s6599_s3 + $0x210] sm:$0xff]  ;;  %v1593_v60 = vld [vmem:[%s6599_s3 + $0x338] sm:$0xff]  ;;  %v1578_v61 = vld [vmem:[%s6599_s3 + $0x2c0] sm:$0xff] }
  0x5b   :  { %3905 = vmatpush3.bf16.msra.mxu1 %v3904_v18  ;;  %3875 = vmatprep.subr.bf16.mxu0 %v3874_v19  ;;  %v1557_v18 = vld [vmem:[%s6599_s3 + $0x218] sm:$0xff]  ;;  %v1588_v19 = vld [vmem:[%s6599_s3 + $0x310] sm:$0xff]  ;;  %v1562_v6 = vld [vmem:[%s6599_s3 + $0x240] sm:$0xff] }
  0x5c   :  { %3907 = vmatprep.subr.bf16.mxu1 %v3906_v22  ;;  %v1574_v22 = vld [vmem:[%s6599_s3 + $0x2a0] sm:$0xff]  ;;  %v3920_v28 = vpack.c.bf16 %v1557_v18, %v1556_v17  ;;  %v1563_v8 = vld [vmem:[%s6599_s3 + $0x248] sm:$0xff]  ;;  %v1612_v18 = vld [vmem:[%s6599_s3 + $0x3d0] sm:$0xff] }
  0x5d   :  { %v3922_v31 = vpack.c.bf16 %v1575_v23, %v1574_v22  ;;  %v1564_v23 = vld [vmem:[%s6599_s3 + $0x250] sm:$0xff] }
  0x5e   :  { %3877 = vmatpush3.bf16.msra.mxu0 %v3876_v7  ;;  %v1606_v7 = vld [vmem:[%s6599_s3 + $0x3a0] sm:$0xff] }
  0x5f   :  { %3909 = vmatpush3.bf16.msra.mxu1 %v3908_v25  ;;  %3879 = vmatprep.subr.bf16.mxu0 %v3878_v30  ;;  %v1607_v25 = vld [vmem:[%s6599_s3 + $0x3a8] sm:$0xff]  ;;  %v3952_v30 = vpack.c.bf16 %v1589_v21, %v1588_v19  ;;  %v1613_v19 = vld [vmem:[%s6599_s3 + $0x3d8] sm:$0xff] }
  0x60   :  { %3911 = vmatprep.subr.bf16.mxu1 %v3910_v34  ;;  %v1590_v34 = vld [vmem:[%s6599_s3 + $0x320] sm:$0xff]  ;;  %v3954_v37 = vpack.c.bf16 %v1607_v25, %v1606_v7  ;;  %v1596_v7 = vld [vmem:[%s6599_s3 + $0x350] sm:$0xff]  ;;  %v3966_v25 = vpack.c.bf16 %v1613_v19, %v1612_v18 }
  0x62   :  { %3881 = vmatpush3.bf16.msra.mxu0 %v3880_v35 }
  0x63   :  { %3913 = vmatpush3.bf16.msra.mxu1 %v3912_v38  ;;  %3915 = vmatprep.subr.bf16.mxu0 %v3914_v41  ;;  %v1591_v38 = vld [vmem:[%s6599_s3 + $0x328] sm:$0xff] }
  0x64   :  { %3947 = vmatprep.subr.bf16.mxu1 %v3946_v43  ;;  %v1609_v43 = vld [vmem:[%s6599_s3 + $0x3b8] sm:$0xff] }
  0x65   :  { %v3958_v59 = vpack.c.bf16 %v1609_v43, %v1608_v42 }
  0xe0   :  { %v388_v55 = vpop.f32.mrb[0].mxu0 }
  0xe1   :  { %v389_v56 = vadd.f32 %v388_v55, %v161_v51  ;;  %v459_v57 = vpop.f32.mrb[0].mxu1  ;;  %v390_v58 = vpop.f32.mrb[1].mxu0  ;;  %v3924_v51 = vpack.c.bf16 %v1559_v33, %v1558_v32  ;;  %v1560_v55 = vld [vmem:[%s6599_s3 + $0x230] sm:$0xff]  ;;  %v1615_v32 = vld [vmem:[%s6599_s3 + $0x3e8] sm:$0xff]  ;;  %v5255_v33 = vsub.s32 4, %v5061_v45 }
  0xe2   :  { %v460_v62 = vadd.f32 %v459_v57, %v169_v52  ;;  %v391_v63 = vadd.f32 %v390_v58, %v165_v53  ;;  %v461_v0 = vpop.f32.mrb[1].mxu1  ;;  %v3956_v53 = vpack.c.bf16 %v1591_v38, %v1590_v34  ;;  %v1592_v57 = vld [vmem:[%s6599_s3 + $0x330] sm:$0xff] }
  0xe3   :  { %v462_v5 = vadd.f32 %v461_v0, %v173_v54  ;;  %v1458_v13 = vmax.f32 %v389_v56, 0.0  ;;  %v3926_v54 = vpack.c.bf16 %v1577_v39, %v1576_v26  ;;  %v1561_v56 = vld [vmem:[%s6599_s3 + $0x238] sm:$0xff]  ;;  %v1611_v0 = vld [vmem:[%s6599_s3 + $0x3c8] sm:$0xff]  ;;  %v3960_v3 = vpack.c.bf16 %v1593_v60, %v1592_v57  ;;  %v1566_v39 = vld [vmem:[%s6599_s3 + $0x260] sm:$0xff] }
  0xe4   :  { %v1460_v10 = vmax.f32 %v460_v62, 0.0  ;;  %v1459_v11 = vmax.f32 %v391_v63, 0.0  ;;  %v1579_v62 = vld [vmem:[%s6599_s3 + $0x2c8] sm:$0xff]  ;;  %v1610_v63 = vld [vmem:[%s6599_s3 + $0x3c0] sm:$0xff]  ;;  %v3928_v1 = vpack.c.bf16 %v1561_v56, %v1560_v55  ;;  %v1616_v55 = vld [vmem:[%s6599_s3 + $0x3f0] sm:$0xff] }
  0xe5   :  { %v1461_v14 = vmax.f32 %v462_v5, 0.0  ;;  %v3930_v5 = vpack.c.bf16 %v1579_v62, %v1578_v61  ;;  %v1617_v56 = vld [vmem:[%s6599_s3 + $0x3f8] sm:$0xff]  ;;  %v5297_v57 = vld [vmem:[%s6598_s2 + $0x8] sm:$0xff]  ;;  %v1568_v62 = vld [vmem:[%s6599_s3 + $0x270] sm:$0xff] }
  0xe6   :  { %2073 = vmatprep.mubr.f32.mxu0 %v1459_v11 }
  0xe7   :  { %2143 = vmatprep.mubr.f32.mxu1 %v1461_v14  ;;  %2074 = vmatmul.mubr.f32.vlgmr.msra.gmra.mrb[16].mxu0 %v1458_v13  ;;  %v3962_v13 = vpack.c.bf16 %v1611_v0, %v1610_v63  ;;  %v1595_v14 = vld [vmem:[%s6599_s3 + $0x348] sm:$0xff]  ;;  %v1569_v63 = vld [vmem:[%s6599_s3 + $0x278] sm:$0xff]  ;;  %v1600_v0 = vld [vmem:[%s6599_s3 + $0x370] sm:$0xff] }
  0xe8   :  { %2144 = vmatmul.mubr.f32.vlgmr.msra.gmra.mrb[16].mxu1 %v1460_v10  ;;  %3917 = vmatpush3.bf16.msra.mxu0 %v3916_v12  ;;  %v5146_v29 = vpop.f32.mrb[2].mxu0  ;;  %v1594_v10 = vld [vmem:[%s6599_s3 + $0x340] sm:$0xff] }
  0xe9   :  { %3949 = vmatpush3.bf16.msra.mxu1 %v3948_v15  ;;  %3919 = vmatprep.subr.bf16.mxu0 %v3918_v16  ;;  %v5157_v35 = vpop.f32.mrb[2].mxu1  ;;  %v532_v36 = vpop.f32.mrb[3].mxu0  ;;  %v1580_v15 = vld [vmem:[%s6599_s3 + $0x2d0] sm:$0xff]  ;;  %v1581_v16 = vld [vmem:[%s6599_s3 + $0x2d8] sm:$0xff]  ;;  %v3964_v21 = vpack.c.bf16 %v1595_v14, %v1594_v10  ;;  %v1666_v10 = vld [vmem:[%s6599_s3 + $0x580] sm:$0xff]  ;;  %v205_v14 = vrot.slane %v5297_v57, %v5078_v50 }
  0xea   :  { %3951 = vmatprep.subr.bf16.mxu1 %v3950_v20  ;;  %v533_v40 = vadd.f32 %v532_v36, %v181_v24  ;;  %v603_v41 = vpop.f32.mrb[3].mxu1  ;;  %v3932_v20 = vpack.c.bf16 %v1563_v8, %v1562_v6  ;;  %v3934_v22 = vpack.c.bf16 %v1581_v16, %v1580_v15  ;;  %v1565_v24 = vld [vmem:[%s6599_s3 + $0x258] sm:$0xff]  ;;  %v5258_v36 = vsub.s32 6, %v5061_v45 }
  0xeb   :  { %v604_v44 = vadd.f32 %v603_v41, %v189_v27  ;;  %v1597_v27 = vld [vmem:[%s6599_s3 + $0x358] sm:$0xff]  ;;  %v3936_v34 = vpack.c.bf16 %v1565_v24, %v1564_v23  ;;  %v1598_v41 = vld [vmem:[%s6599_s3 + $0x360] sm:$0xff]  ;;  %v197_v6 = vrot.slane %v5297_v57, %v5075_v49  ;;  %v3944_v16 = vpack.c.bf16 %v1569_v63, %v1568_v62 }
  0xec   :  { %3921 = vmatpush3.bf16.msra.mxu0 %v3920_v28  ;;  %v1463_v52 = vmax.f32 %v533_v40, 0.0  ;;  %v1582_v28 = vld [vmem:[%s6599_s3 + $0x2e0] sm:$0xff]  ;;  %v3968_v38 = vpack.c.bf16 %v1597_v27, %v1596_v7  ;;  %v1567_v40 = vld [vmem:[%s6599_s3 + $0x268] sm:$0xff]  ;;  %v1637_v27 = vld [vmem:[%s6599_s3 + $0x498] sm:$0xff] }
  0xed   :  { %3953 = vmatpush3.bf16.msra.mxu1 %v3952_v30  ;;  %3923 = vmatprep.subr.bf16.mxu0 %v3922_v31  ;;  %v1465_v58 = vmax.f32 %v604_v44, 0.0  ;;  %v1583_v30 = vld [vmem:[%s6599_s3 + $0x2e8] sm:$0xff]  ;;  %v1614_v31 = vld [vmem:[%s6599_s3 + $0x3e0] sm:$0xff] }
  0xee   :  { %3955 = vmatprep.subr.bf16.mxu1 %v3954_v37  ;;  %2213 = vmatprep.mubr.f32.mxu0 %v1463_v52  ;;  %v3938_v26 = vpack.c.bf16 %v1583_v30, %v1582_v28  ;;  %v3970_v43 = vpack.c.bf16 %v1615_v32, %v1614_v31  ;;  %v1599_v44 = vld [vmem:[%s6599_s3 + $0x368] sm:$0xff]  ;;  %v1585_v52 = vld [vmem:[%s6599_s3 + $0x2f8] sm:$0xff]  ;;  %v1668_v32 = vld [vmem:[%s6599_s3 + $0x590] sm:$0xff] }
  0xef   :  { %2283 = vmatprep.mubr.f32.mxu1 %v1465_v58  ;;  %v185_v58 = vrot.slane %v5069_v47, %v5258_v36  ;;  %v3972_v60 = vpack.c.bf16 %v1599_v44, %v1598_v41  ;;  %v1651_v7 = vld [vmem:[%s6599_s3 + $0x508] sm:$0xff]  ;;  %v1620_v41 = vld [vmem:[%s6599_s3 + $0x410] sm:$0xff] }
  0xf0   :  { %3925 = vmatpush3.bf16.msra.mxu0 %v3924_v51  ;;  %v5198_v2 = vpop.f32.mrb[4].mxu0  ;;  %v1584_v51 = vld [vmem:[%s6599_s3 + $0x2f0] sm:$0xff] }
  0xf1   :  { %3957 = vmatpush3.bf16.msra.mxu1 %v3956_v53  ;;  %3927 = vmatprep.subr.bf16.mxu0 %v3926_v54  ;;  %v5209_v11 = vpop.f32.mrb[4].mxu1  ;;  %v5211_v12 = vpop.f32.mrb[5].mxu0  ;;  %v177_v54 = vrot.slane %v5069_v47, %v5255_v33  ;;  %v3942_v61 = vpack.c.bf16 %v1585_v52, %v1584_v51  ;;  %v1601_v47 = vld [vmem:[%s6599_s3 + $0x378] sm:$0xff]  ;;  %v602_v15 = vadd.f32 %v5157_v35, %v185_v58  ;;  %v1650_v35 = vld [vmem:[%s6599_s3 + $0x500] sm:$0xff]  ;;  %v1652_v44 = vld [vmem:[%s6599_s3 + $0x510] sm:$0xff] }
  0xf2   :  { %3959 = vmatprep.subr.bf16.mxu1 %v3958_v59  ;;  %v5222_v17 = vpop.f32.mrb[5].mxu1  ;;  %v3940_v59 = vpack.c.bf16 %v1567_v40, %v1566_v39  ;;  %v675_v28 = vadd.f32 %v5211_v12, %v197_v6  ;;  %v4012_v40 = vpack.c.bf16 %v1651_v7, %v1650_v35  ;;  %v1653_v51 = vld [vmem:[%s6599_s3 + $0x518] sm:$0xff]  ;;  %v1638_v52 = vld [vmem:[%s6599_s3 + $0x4a0] sm:$0xff]  ;;  %v1671_v58 = vld [vmem:[%s6599_s3 + $0x5a8] sm:$0xff] }
  0xf3   :  { %v531_v8 = vadd.f32 %v5146_v29, %v177_v54  ;;  %v3976_v29 = vpack.c.bf16 %v1601_v47, %v1600_v0  ;;  %v1639_v54 = vld [vmem:[%s6599_s3 + $0x4a8] sm:$0xff]  ;;  %v4016_v62 = vpack.c.bf16 %v1653_v51, %v1652_v44  ;;  %v1622_v0 = vld [vmem:[%s6599_s3 + $0x420] sm:$0xff]  ;;  %v1625_v35 = vld [vmem:[%s6599_s3 + $0x438] sm:$0xff] }
  0xf4   :  { %3929 = vmatpush3.bf16.msra.mxu0 %v3928_v1  ;;  %v3974_v1 = vpack.c.bf16 %v1617_v56, %v1616_v55  ;;  %v1467_v55 = vmax.f32 %v675_v28, 0.0  ;;  %v1670_v56 = vld [vmem:[%s6599_s3 + $0x5a0] sm:$0xff]  ;;  %v3986_v63 = vpack.c.bf16 %v1639_v54, %v1638_v52  ;;  %v1643_v28 = vld [vmem:[%s6599_s3 + $0x4c8] sm:$0xff]  ;;  %v1645_v51 = vld [vmem:[%s6599_s3 + $0x4d8] sm:$0xff] }
  0xf5   :  { %3961 = vmatpush3.bf16.msra.mxu1 %v3960_v3  ;;  %3931 = vmatprep.subr.bf16.mxu0 %v3930_v5  ;;  %v1634_v3 = vld [vmem:[%s6599_s3 + $0x480] sm:$0xff]  ;;  %v1635_v5 = vld [vmem:[%s6599_s3 + $0x488] sm:$0xff]  ;;  %v1462_v31 = vmax.f32 %v531_v8, 0.0  ;;  %v4018_v6 = vpack.c.bf16 %v1671_v58, %v1670_v56  ;;  %v1677_v56 = vld [vmem:[%s6599_s3 + $0x5d8] sm:$0xff] }
  0xf6   :  { %3963 = vmatprep.subr.bf16.mxu1 %v3962_v13  ;;  %v1667_v13 = vld [vmem:[%s6599_s3 + $0x588] sm:$0xff]  ;;  %v3978_v19 = vpack.c.bf16 %v1635_v5, %v1634_v3  ;;  %v1654_v47 = vld [vmem:[%s6599_s3 + $0x520] sm:$0xff] }
  0xf7   :  { %v4010_v24 = vpack.c.bf16 %v1667_v13, %v1666_v10  ;;  %v1655_v8 = vld [vmem:[%s6599_s3 + $0x528] sm:$0xff]  ;;  %v1640_v10 = vld [vmem:[%s6599_s3 + $0x4b0] sm:$0xff]  ;;  %v1641_v13 = vld [vmem:[%s6599_s3 + $0x4b8] sm:$0xff] }
  0xf8   :  { %3933 = vmatpush3.bf16.msra.mxu0 %v3932_v20  ;;  %v5260_v37 = vpop.f32.mrb[6].mxu0  ;;  %v1618_v20 = vld [vmem:[%s6599_s3 + $0x400] sm:$0xff]  ;;  %v1659_v44 = vld [vmem:[%s6599_s3 + $0x548] sm:$0xff] }
  0xf9   :  { %3965 = vmatpush3.bf16.msra.mxu1 %v3964_v21  ;;  %3935 = vmatprep.subr.bf16.mxu0 %v3934_v22  ;;  %v5271_v45 = vpop.f32.mrb[6].mxu1  ;;  %v5273_v42 = vpop.f32.mrb[7].mxu0  ;;  %v1619_v21 = vld [vmem:[%s6599_s3 + $0x408] sm:$0xff] }
  0xfa   :  { %3967 = vmatprep.subr.bf16.mxu1 %v3966_v25  ;;  %v5284_v53 = vpop.f32.mrb[7].mxu1  ;;  %v1636_v25 = vld [vmem:[%s6599_s3 + $0x490] sm:$0xff]  ;;  %v3980_v39 = vpack.c.bf16 %v1619_v21, %v1618_v20  ;;  %v3990_v20 = vpack.c.bf16 %v1641_v13, %v1640_v10  ;;  %v1647_v10 = vld [vmem:[%s6599_s3 + $0x4e8] sm:$0xff]  ;;  %v1678_v13 = vld [vmem:[%s6599_s3 + $0x5e0] sm:$0xff] }
  0xfb   :  { %v3982_v12 = vpack.c.bf16 %v1637_v27, %v1636_v25  ;;  %v1624_v21 = vld [vmem:[%s6599_s3 + $0x430] sm:$0xff]  ;;  %v1657_v25 = vld [vmem:[%s6599_s3 + $0x538] sm:$0xff]  ;;  %v1642_v27 = vld [vmem:[%s6599_s3 + $0x4c0] sm:$0xff] }
  0xfc   :  { %3937 = vmatpush3.bf16.msra.mxu0 %v3936_v34  ;;  %v1669_v34 = vld [vmem:[%s6599_s3 + $0x598] sm:$0xff] }
  0xfd   :  { %3969 = vmatpush3.bf16.msra.mxu1 %v3968_v38  ;;  %3939 = vmatprep.subr.bf16.mxu0 %v3938_v26  ;;  %v746_v38 = vadd.f32 %v5222_v17, %v205_v14  ;;  %v1464_v26 = vmax.f32 %v602_v15, 0.0  ;;  %v4014_v17 = vpack.c.bf16 %v1669_v34, %v1668_v32  ;;  %v1672_v15 = vld [vmem:[%s6599_s3 + $0x5b0] sm:$0xff]  ;;  %v1675_v32 = vld [vmem:[%s6599_s3 + $0x5c8] sm:$0xff]  ;;  %v3992_v34 = vpack.c.bf16 %v1625_v35, %v1624_v21  ;;  %v1662_v35 = vld [vmem:[%s6599_s3 + $0x560] sm:$0xff] }
  0xfe   :  { %3971 = vmatprep.subr.bf16.mxu1 %v3970_v43  ;;  %v1621_v43 = vld [vmem:[%s6599_s3 + $0x418] sm:$0xff]  ;;  %v1631_v21 = vld [vmem:[%s6599_s3 + $0x468] sm:$0xff] }
 0x100   :  { %3941 = vmatpush3.bf16.msra.mxu0 %v3940_v59  ;;  %v5331_v18 = vpop.f32.mrb[8].mxu0  ;;  %v1469_v59 = vmax.f32 %v746_v38, 0.0 }
 0x101   :  { %3973 = vmatpush3.bf16.msra.mxu1 %v3972_v60  ;;  %3943 = vmatprep.subr.bf16.mxu0 %v3942_v61  ;;  %v5342_v22 = vpop.f32.mrb[8].mxu1  ;;  %v5344_v23 = vpop.f32.mrb[9].mxu0  ;;  %v3984_v60 = vpack.c.bf16 %v1621_v43, %v1620_v41 }
 0x102   :  { %3975 = vmatprep.subr.bf16.mxu1 %v3974_v1  ;;  %v5356_v30 = vpop.f32.mrb[9].mxu1  ;;  %v1623_v1 = vld [vmem:[%s6599_s3 + $0x428] sm:$0xff] }
 0x104   :  { %3945 = vmatpush3.bf16.msra.mxu0 %v3944_v16  ;;  %v1673_v16 = vld [vmem:[%s6599_s3 + $0x5b8] sm:$0xff] }
 0x105   :  { %3977 = vmatpush3.bf16.msra.mxu1 %v3976_v29  ;;  %3979 = vmatprep.subr.bf16.mxu0 %v3978_v19  ;;  %v3988_v29 = vpack.c.bf16 %v1623_v1, %v1622_v0  ;;  %v4020_v19 = vpack.c.bf16 %v1655_v8, %v1654_v47  ;;  %v4022_v7 = vpack.c.bf16 %v1673_v16, %v1672_v15  ;;  %v1660_v0 = vld [vmem:[%s6599_s3 + $0x550] sm:$0xff]  ;;  %v1646_v8 = vld [vmem:[%s6599_s3 + $0x4e0] sm:$0xff]  ;;  %v1679_v15 = vld [vmem:[%s6599_s3 + $0x5e8] sm:$0xff] }
 0x106   :  { %4011 = vmatprep.subr.bf16.mxu1 %v4010_v24  ;;  %v1656_v24 = vld [vmem:[%s6599_s3 + $0x530] sm:$0xff] }
 0x107   :  { %2214 = vmatmul.mubr.f32.vlgmr.msra.gmra.mrb[18].mxu0 %v1462_v31  ;;  %v1674_v31 = vld [vmem:[%s6599_s3 + $0x5c0] sm:$0xff]  ;;  %v4024_v38 = vpack.c.bf16 %v1657_v25, %v1656_v24  ;;  %v1663_v25 = vld [vmem:[%s6599_s3 + $0x568] sm:$0xff] }
 0x108   :  { %2284 = vmatmul.mubr.f32.vlgmr.msra.gmra.mrb[18].mxu1 %v1464_v26  ;;  %3981 = vmatpush3.bf16.msra.mxu0 %v3980_v39  ;;  %v5389_v61 = vpop.f32.mrb[10].mxu0  ;;  %v3994_v26 = vpack.c.bf16 %v1643_v28, %v1642_v27  ;;  %v1626_v39 = vld [vmem:[%s6599_s3 + $0x440] sm:$0xff]  ;;  %v4026_v43 = vpack.c.bf16 %v1675_v32, %v1674_v31  ;;  %v1648_v27 = vld [vmem:[%s6599_s3 + $0x4f0] sm:$0xff]  ;;  %v1649_v28 = vld [vmem:[%s6599_s3 + $0x4f8] sm:$0xff] }
 0x109   :  { %4013 = vmatpush3.bf16.msra.mxu1 %v4012_v40  ;;  %3983 = vmatprep.subr.bf16.mxu0 %v3982_v12  ;;  %v5400_v3 = vpop.f32.mrb[10].mxu1  ;;  %v5402_v5 = vpop.f32.mrb[11].mxu0  ;;  %v1627_v40 = vld [vmem:[%s6599_s3 + $0x448] sm:$0xff]  ;;  %v1658_v12 = vld [vmem:[%s6599_s3 + $0x540] sm:$0xff] }
 0x10a   :  { %4015 = vmatprep.subr.bf16.mxu1 %v4014_v17  ;;  %2353 = vmatprep.mubr.f32.mxu0 %v1467_v55  ;;  %v5413_v14 = vpop.f32.mrb[11].mxu1  ;;  %v1644_v17 = vld [vmem:[%s6599_s3 + $0x4d0] sm:$0xff]  ;;  %v3996_v58 = vpack.c.bf16 %v1627_v40, %v1626_v39  ;;  %v201_v39 = vrot.slane %v5297_v57, %v5072_v48 }
 0x10b   :  { %2423 = vmatprep.mubr.f32.mxu1 %v1469_v59  ;;  %v1676_v55 = vld [vmem:[%s6599_s3 + $0x5d0] sm:$0xff]  ;;  %v4028_v59 = vpack.c.bf16 %v1659_v44, %v1658_v12  ;;  %v4036_v12 = vpack.c.bf16 %v1663_v25, %v1662_v35 }
 0x10c   :  { %3985 = vmatpush3.bf16.msra.mxu0 %v3984_v60  ;;  %v3998_v60 = vpack.c.bf16 %v1645_v51, %v1644_v17  ;;  %v4030_v47 = vpack.c.bf16 %v1677_v56, %v1676_v55  ;;  %v1632_v44 = vld [vmem:[%s6599_s3 + $0x470] sm:$0xff]  ;;  %v1633_v17 = vld [vmem:[%s6599_s3 + $0x478] sm:$0xff] }
 0x10d   :  { %4017 = vmatpush3.bf16.msra.mxu1 %v4016_v62  ;;  %3987 = vmatprep.subr.bf16.mxu0 %v3986_v63  ;;  %v1628_v62 = vld [vmem:[%s6599_s3 + $0x450] sm:$0xff]  ;;  %v1629_v63 = vld [vmem:[%s6599_s3 + $0x458] sm:$0xff] }
 0x10e   :  { %4019 = vmatprep.subr.bf16.mxu1 %v4018_v6  ;;  %v1661_v6 = vld [vmem:[%s6599_s3 + $0x558] sm:$0xff]  ;;  %v4000_v16 = vpack.c.bf16 %v1629_v63, %v1628_v62  ;;  %v1664_v51 = vld [vmem:[%s6599_s3 + $0x570] sm:$0xff]  ;;  %v213_v62 = vrot.slane %v5297_v57, %v5107_v4 }
 0x10f   :  { %v1732_v25 = vld [vmem:[%s6599_s3 + $0x790] sm:$0xff] }
 0x110   :  { %3989 = vmatpush3.bf16.msra.mxu0 %v3988_v29  ;;  %v5454_v41 = vpop.f32.mrb[12].mxu0  ;;  %v4032_v29 = vpack.c.bf16 %v1661_v6, %v1660_v0  ;;  %v1730_v0 = vld [vmem:[%s6599_s3 + $0x780] sm:$0xff]  ;;  %v221_v6 = vrot.slane %v5297_v57, %v5116_v9  ;;  %v817_v35 = vadd.f32 %v5273_v42, %v213_v62  ;;  %v1684_v42 = vld [vmem:[%s6599_s3 + $0x610] sm:$0xff] }
 0x111   :  { %4021 = vmatpush3.bf16.msra.mxu1 %v4020_v19  ;;  %3991 = vmatprep.subr.bf16.mxu0 %v3990_v20  ;;  %v5465_v52 = vpop.f32.mrb[13].mxu0  ;;  %v5467_v54 = vpop.f32.mrb[12].mxu1  ;;  %v4002_v19 = vpack.c.bf16 %v1647_v10, %v1646_v8  ;;  %v1630_v20 = vld [vmem:[%s6599_s3 + $0x460] sm:$0xff]  ;;  %v744_v8 = vadd.f32 %v5209_v11, %v201_v39  ;;  %v4008_v10 = vpack.c.bf16 %v1633_v17, %v1632_v44  ;;  %v1703_v17 = vld [vmem:[%s6599_s3 + $0x6a8] sm:$0xff] }
 0x112   :  { %4023 = vmatprep.subr.bf16.mxu1 %v4022_v7  ;;  %v5484_v1 = vpop.f32.mrb[13].mxu1  ;;  %v4034_v7 = vpack.c.bf16 %v1679_v15, %v1678_v13  ;;  %v4004_v40 = vpack.c.bf16 %v1631_v21, %v1630_v20  ;;  %v1700_v20 = vld [vmem:[%s6599_s3 + $0x690] sm:$0xff]  ;;  %v1701_v21 = vld [vmem:[%s6599_s3 + $0x698] sm:$0xff]  ;;  %v1702_v44 = vld [vmem:[%s6599_s3 + $0x6a0] sm:$0xff] }
 0x113   :  { %v4046_v39 = vpack.c.bf16 %v1701_v21, %v1700_v20  ;;  %v1688_v20 = vld [vmem:[%s6599_s3 + $0x630] sm:$0xff]  ;;  %v1689_v21 = vld [vmem:[%s6599_s3 + $0x638] sm:$0xff] }
 0x114   :  { %3993 = vmatpush3.bf16.msra.mxu0 %v3992_v34  ;;  %v193_v34 = vrot.slane %v5297_v57, %v5064_v46 }
 0x115   :  { %4025 = vmatpush3.bf16.msra.mxu1 %v4024_v38  ;;  %3995 = vmatprep.subr.bf16.mxu0 %v3994_v26  ;;  %v1680_v38 = vld [vmem:[%s6599_s3 + $0x5f0] sm:$0xff]  ;;  %v1681_v26 = vld [vmem:[%s6599_s3 + $0x5f8] sm:$0xff] }
 0x116   :  { %4027 = vmatprep.subr.bf16.mxu1 %v4026_v43  ;;  %v4006_v43 = vpack.c.bf16 %v1649_v28, %v1648_v27  ;;  %v4038_v56 = vpack.c.bf16 %v1681_v26, %v1680_v38  ;;  %v673_v63 = vadd.f32 %v5198_v2, %v193_v34  ;;  %v1682_v2 = vld [vmem:[%s6599_s3 + $0x600] sm:$0xff]  ;;  %v1733_v27 = vld [vmem:[%s6599_s3 + $0x798] sm:$0xff]  ;;  %v888_v28 = vadd.f32 %v5284_v53, %v221_v6 }
 0x117   :  { %v1468_v34 = vmax.f32 %v744_v8, 0.0  ;;  %v4078_v53 = vpack.c.bf16 %v1733_v27, %v1732_v25  ;;  %v1718_v6 = vld [vmem:[%s6599_s3 + $0x720] sm:$0xff]  ;;  %v1721_v25 = vld [vmem:[%s6599_s3 + $0x738] sm:$0xff] }
 0x118   :  { %3997 = vmatpush3.bf16.msra.mxu0 %v3996_v58  ;;  %v5510_v24 = vpop.f32.mrb[14].mxu0  ;;  %v1665_v58 = vld [vmem:[%s6599_s3 + $0x578] sm:$0xff]  ;;  %v1706_v27 = vld [vmem:[%s6599_s3 + $0x6c0] sm:$0xff] }
 0x119   :  { %4029 = vmatpush3.bf16.msra.mxu1 %v4028_v59  ;;  %3999 = vmatprep.subr.bf16.mxu0 %v3998_v60  ;;  %v5521_v31 = vpop.f32.mrb[15].mxu0  ;;  %v5523_v32 = vpop.f32.mrb[14].mxu1  ;;  %v1698_v59 = vld [vmem:[%s6599_s3 + $0x680] sm:$0xff]  ;;  %v1699_v60 = vld [vmem:[%s6599_s3 + $0x688] sm:$0xff]  ;;  %v4040_v13 = vpack.c.bf16 %v1665_v58, %v1664_v51  ;;  %v1471_v51 = vmax.f32 %v817_v35, 0.0  ;;  %v1720_v35 = vld [vmem:[%s6599_s3 + $0x730] sm:$0xff] }
 0x11a   :  { %4031 = vmatprep.subr.bf16.mxu1 %v4030_v47  ;;  %v5544_v55 = vpop.f32.mrb[15].mxu1  ;;  %v1731_v47 = vld [vmem:[%s6599_s3 + $0x788] sm:$0xff]  ;;  %v4042_v15 = vpack.c.bf16 %v1699_v60, %v1698_v59  ;;  %v1473_v59 = vmax.f32 %v888_v28, 0.0 }
 0x11b   :  { %v4074_v11 = vpack.c.bf16 %v1731_v47, %v1730_v0  ;;  %v1735_v58 = vld [vmem:[%s6599_s3 + $0x7a8] sm:$0xff]  ;;  %v1686_v0 = vld [vmem:[%s6599_s3 + $0x620] sm:$0xff] }
 0x11c   :  { %4001 = vmatpush3.bf16.msra.mxu0 %v4000_v16  ;;  %v1683_v16 = vld [vmem:[%s6599_s3 + $0x608] sm:$0xff] }
 0x11d   :  { %4033 = vmatpush3.bf16.msra.mxu1 %v4032_v29  ;;  %4003 = vmatprep.subr.bf16.mxu0 %v4002_v19  ;;  %v1714_v29 = vld [vmem:[%s6599_s3 + $0x700] sm:$0xff]  ;;  %v1715_v19 = vld [vmem:[%s6599_s3 + $0x708] sm:$0xff]  ;;  %v4044_v38 = vpack.c.bf16 %v1683_v16, %v1682_v2  ;;  %v1736_v2 = vld [vmem:[%s6599_s3 + $0x7b0] sm:$0xff] }
 0x11e   :  { %4035 = vmatprep.subr.bf16.mxu1 %v4034_v7  ;;  %v1466_v7 = vmax.f32 %v673_v63, 0.0  ;;  %v4076_v26 = vpack.c.bf16 %v1715_v19, %v1714_v29  ;;  %v4050_v63 = vpack.c.bf16 %v1703_v17, %v1702_v44  ;;  %v1687_v47 = vld [vmem:[%s6599_s3 + $0x628] sm:$0xff]  ;;  %v1737_v16 = vld [vmem:[%s6599_s3 + $0x7b8] sm:$0xff]  ;;  %v1708_v17 = vld [vmem:[%s6599_s3 + $0x6d0] sm:$0xff] }
 0x11f   :  { %v4052_v29 = vpack.c.bf16 %v1687_v47, %v1686_v0  ;;  %v1707_v28 = vld [vmem:[%s6599_s3 + $0x6c8] sm:$0xff]  ;;  %v1693_v0 = vld [vmem:[%s6599_s3 + $0x658] sm:$0xff]  ;;  %v1724_v47 = vld [vmem:[%s6599_s3 + $0x750] sm:$0xff] }
 0x120   :  { %4005 = vmatpush3.bf16.msra.mxu0 %v4004_v40  ;;  %v1685_v40 = vld [vmem:[%s6599_s3 + $0x618] sm:$0xff]  ;;  %v1723_v44 = vld [vmem:[%s6599_s3 + $0x748] sm:$0xff] }
 0x121   :  { %4037 = vmatpush3.bf16.msra.mxu1 %v4036_v12  ;;  %4007 = vmatprep.subr.bf16.mxu0 %v4006_v43  ;;  %v1716_v12 = vld [vmem:[%s6599_s3 + $0x710] sm:$0xff]  ;;  %v1717_v43 = vld [vmem:[%s6599_s3 + $0x718] sm:$0xff]  ;;  %v4048_v60 = vpack.c.bf16 %v1685_v40, %v1684_v42  ;;  %v4058_v42 = vpack.c.bf16 %v1707_v28, %v1706_v27  ;;  %v1690_v40 = vld [vmem:[%s6599_s3 + $0x640] sm:$0xff]  ;;  %v209_v28 = vrot.slane %v5297_v57, %v5255_v33 }
 0x122   :  { %4039 = vmatprep.subr.bf16.mxu1 %v4038_v56  ;;  %v1734_v56 = vld [vmem:[%s6599_s3 + $0x7a0] sm:$0xff]  ;;  %v4080_v62 = vpack.c.bf16 %v1717_v43, %v1716_v12  ;;  %v1691_v12 = vld [vmem:[%s6599_s3 + $0x648] sm:$0xff]  ;;  %v1713_v27 = vld [vmem:[%s6599_s3 + $0x6f8] sm:$0xff] }
 0x123   :  { %v4082_v8 = vpack.c.bf16 %v1735_v58, %v1734_v56  ;;  %v1740_v56 = vld [vmem:[%s6599_s3 + $0x7d0] sm:$0xff]  ;;  %v1741_v58 = vld [vmem:[%s6599_s3 + $0x7d8] sm:$0xff] }
 0x124   :  { %4009 = vmatpush3.bf16.msra.mxu0 %v4008_v10  ;;  %v1719_v10 = vld [vmem:[%s6599_s3 + $0x728] sm:$0xff] }
 0x125   :  { %4041 = vmatpush3.bf16.msra.mxu1 %v4040_v13  ;;  %4043 = vmatprep.subr.bf16.mxu0 %v4042_v15  ;;  %v1704_v13 = vld [vmem:[%s6599_s3 + $0x6b0] sm:$0xff]  ;;  %v1705_v15 = vld [vmem:[%s6599_s3 + $0x6b8] sm:$0xff] }
 0x126   :  { %4075 = vmatprep.subr.bf16.mxu1 %v4074_v11  ;;  %v4084_v11 = vpack.c.bf16 %v1719_v10, %v1718_v6  ;;  %v4054_v19 = vpack.c.bf16 %v1705_v15, %v1704_v13  ;;  %v4094_v6 = vpack.c.bf16 %v1741_v58, %v1740_v56  ;;  %v1710_v10 = vld [vmem:[%s6599_s3 + $0x6e0] sm:$0xff]  ;;  %v1711_v13 = vld [vmem:[%s6599_s3 + $0x6e8] sm:$0xff] }
 0x127   :  { %2354 = vmatmul.mubr.f32.vlgmr.msra.gmra.mrb[20].mxu0 %v1466_v7  ;;  %v4086_v7 = vpack.c.bf16 %v1737_v16, %v1736_v2  ;;  %v1742_v15 = vld [vmem:[%s6599_s3 + $0x7e0] sm:$0xff]  ;;  %v1743_v2 = vld [vmem:[%s6599_s3 + $0x7e8] sm:$0xff] }
 0x128   :  { %2424 = vmatmul.mubr.f32.vlgmr.msra.gmra.mrb[20].mxu1 %v1468_v34  ;;  %4045 = vmatpush3.bf16.msra.mxu0 %v4044_v38  ;;  %v1738_v34 = vld [vmem:[%s6599_s3 + $0x7c0] sm:$0xff]  ;;  %v1739_v38 = vld [vmem:[%s6599_s3 + $0x7c8] sm:$0xff] }
 0x129   :  { %4077 = vmatpush3.bf16.msra.mxu1 %v4076_v26  ;;  %4047 = vmatprep.subr.bf16.mxu0 %v4046_v39  ;;  %v4056_v26 = vpack.c.bf16 %v1689_v21, %v1688_v20  ;;  %v4088_v39 = vpack.c.bf16 %v1721_v25, %v1720_v35  ;;  %v4090_v43 = vpack.c.bf16 %v1739_v38, %v1738_v34  ;;  %v1695_v20 = vld [vmem:[%s6599_s3 + $0x668] sm:$0xff]  ;;  %v1726_v21 = vld [vmem:[%s6599_s3 + $0x760] sm:$0xff]  ;;  %v1712_v25 = vld [vmem:[%s6599_s3 + $0x6f0] sm:$0xff] }
 0x12a   :  { %4079 = vmatprep.subr.bf16.mxu1 %v4078_v53  ;;  %2493 = vmatprep.mubr.f32.mxu0 %v1471_v51  ;;  %v1722_v53 = vld [vmem:[%s6599_s3 + $0x740] sm:$0xff]  ;;  %v1709_v51 = vld [vmem:[%s6599_s3 + $0x6d8] sm:$0xff]  ;;  %v4098_v35 = vpack.c.bf16 %v1743_v2, %v1742_v15  ;;  %v1744_v34 = vld [vmem:[%s6599_s3 + $0x7f0] sm:$0xff] }
 0x12b   :  { %2563 = vmatprep.mubr.f32.mxu1 %v1473_v59  ;;  %v4060_v59 = vpack.c.bf16 %v1691_v12, %v1690_v40  ;;  %v1745_v38 = vld [vmem:[%s6599_s3 + $0x7f8] sm:$0xff]  ;;  %v4070_v12 = vpack.c.bf16 %v1713_v27, %v1712_v25  ;;  %v1763_v56 = vld [vmem:[%s6599_s3 + $0x888] sm:$0xff]  ;;  %v1764_v2 = vld [vmem:[%s6599_s3 + $0x890] sm:$0xff] }
 0x12c   :  { %4049 = vmatpush3.bf16.msra.mxu0 %v4048_v60  ;;  %v4092_v60 = vpack.c.bf16 %v1723_v44, %v1722_v53  ;;  %v1696_v53 = vld [vmem:[%s6599_s3 + $0x670] sm:$0xff]  ;;  %v1779_v15 = vld [vmem:[%s6599_s3 + $0x908] sm:$0xff] }
 0x12d   :  { %4081 = vmatpush3.bf16.msra.mxu1 %v4080_v62  ;;  %4051 = vmatprep.subr.bf16.mxu0 %v4050_v63  ;;  %v4062_v62 = vpack.c.bf16 %v1709_v51, %v1708_v17  ;;  %v1692_v63 = vld [vmem:[%s6599_s3 + $0x650] sm:$0xff]  ;;  %v4102_v17 = vpack.c.bf16 %v1745_v38, %v1744_v34  ;;  %v1762_v51 = vld [vmem:[%s6599_s3 + $0x880] sm:$0xff]  ;;  %v1781_v38 = vld [vmem:[%s6599_s3 + $0x918] sm:$0xff] }
 0x12e   :  { %4083 = vmatprep.subr.bf16.mxu1 %v4082_v8  ;;  %v1725_v8 = vld [vmem:[%s6599_s3 + $0x758] sm:$0xff]  ;;  %v4064_v16 = vpack.c.bf16 %v1693_v0, %v1692_v63  ;;  %v1728_v44 = vld [vmem:[%s6599_s3 + $0x770] sm:$0xff] }
 0x12f   :  { %v1780_v34 = vld [vmem:[%s6599_s3 + $0x910] sm:$0xff] }
 0x130   :  { %4053 = vmatpush3.bf16.msra.mxu0 %v4052_v29  ;;  %v4096_v29 = vpack.c.bf16 %v1725_v8, %v1724_v47  ;;  %v4106_v8 = vpack.c.bf16 %v1763_v56, %v1762_v51  ;;  %v1750_v51 = vld [vmem:[%s6599_s3 + $0x820] sm:$0xff]  ;;  %v1751_v56 = vld [vmem:[%s6599_s3 + $0x828] sm:$0xff] }
 0x131   :  { %4085 = vmatpush3.bf16.msra.mxu1 %v4084_v11  ;;  %4055 = vmatprep.subr.bf16.mxu0 %v4054_v19  ;;  %v4066_v11 = vpack.c.bf16 %v1711_v13, %v1710_v10  ;;  %v1694_v19 = vld [vmem:[%s6599_s3 + $0x660] sm:$0xff]  ;;  %v1747_v10 = vld [vmem:[%s6599_s3 + $0x808] sm:$0xff] }
 0x132   :  { %4087 = vmatprep.subr.bf16.mxu1 %v4086_v7  ;;  %v1727_v7 = vld [vmem:[%s6599_s3 + $0x768] sm:$0xff]  ;;  %v1778_v13 = vld [vmem:[%s6599_s3 + $0x900] sm:$0xff] }
 0x133   :  { %v4100_v40 = vpack.c.bf16 %v1727_v7, %v1726_v21  ;;  %v4140_v25 = vpack.c.bf16 %v1779_v15, %v1778_v13  ;;  %v1753_v13 = vld [vmem:[%s6599_s3 + $0x838] sm:$0xff] }
 0x134   :  { %4057 = vmatpush3.bf16.msra.mxu0 %v4056_v26  ;;  %v5742_v26 = vld [vmem:[%s6598_s2 + $0x10] sm:$0xff] }
 0x135   :  { %4089 = vmatpush3.bf16.msra.mxu1 %v4088_v39  ;;  %4059 = vmatprep.subr.bf16.mxu0 %v4058_v42  ;;  %v217_v39 = vrot.slane %v5297_v57, %v5258_v36  ;;  %v4068_v42 = vpack.c.bf16 %v1695_v20, %v1694_v19  ;;  %v1729_v57 = vld [vmem:[%s6599_s3 + $0x778] sm:$0xff]  ;;  %v229_v58 = vrot.slane %v5742_v26, %v5075_v49  ;;  %v1796_v19 = vld [vmem:[%s6599_s3 + $0x990] sm:$0xff] }
 0x136   :  { %4091 = vmatprep.subr.bf16.mxu1 %v4090_v43  ;;  %v1697_v43 = vld [vmem:[%s6599_s3 + $0x678] sm:$0xff]  ;;  %v237_v63 = vrot.slane %v5742_v26, %v5078_v50 }
 0x137   :  { %v886_v0 = vadd.f32 %v5271_v45, %v217_v39  ;;  %v4072_v47 = vpack.c.bf16 %v1697_v43, %v1696_v53  ;;  %v1797_v20 = vld [vmem:[%s6599_s3 + $0x998] sm:$0xff]  ;;  %v1766_v39 = vld [vmem:[%s6599_s3 + $0x8a0] sm:$0xff]  ;;  %v1799_v53 = vld [vmem:[%s6599_s3 + $0x9a8] sm:$0xff] }
 0x138   :  { %4061 = vmatpush3.bf16.msra.mxu0 %v4060_v59  ;;  %v815_v59 = vadd.f32 %v5260_v37, %v209_v28  ;;  %v1746_v37 = vld [vmem:[%s6599_s3 + $0x800] sm:$0xff]  ;;  %v1030_v21 = vadd.f32 %v5356_v30, %v237_v63  ;;  %v1749_v28 = vld [vmem:[%s6599_s3 + $0x818] sm:$0xff]  ;;  %v4142_v30 = vpack.c.bf16 %v1797_v20, %v1796_v19  ;;  %v1803_v19 = vld [vmem:[%s6599_s3 + $0x9c8] sm:$0xff] }
 0x139   :  { %4093 = vmatpush3.bf16.msra.mxu1 %v4092_v60  ;;  %4063 = vmatprep.subr.bf16.mxu0 %v4062_v62  ;;  %v1794_v60 = vld [vmem:[%s6599_s3 + $0x980] sm:$0xff]  ;;  %v1795_v62 = vld [vmem:[%s6599_s3 + $0x988] sm:$0xff]  ;;  %v4108_v7 = vpack.c.bf16 %v1747_v10, %v1746_v37  ;;  %v1769_v63 = vld [vmem:[%s6599_s3 + $0x8b8] sm:$0xff] }
 0x13a   :  { %4095 = vmatprep.subr.bf16.mxu1 %v4094_v6  ;;  %v4104_v6 = vpack.c.bf16 %v1729_v57, %v1728_v44  ;;  %v4138_v45 = vpack.c.bf16 %v1795_v62, %v1794_v60  ;;  %v1477_v43 = vmax.f32 %v1030_v21, 0.0  ;;  %v1783_v60 = vld [vmem:[%s6599_s3 + $0x928] sm:$0xff]  ;;  %v1768_v62 = vld [vmem:[%s6599_s3 + $0x8b0] sm:$0xff] }
 0x13b   :  { %v4118_v37 = vpack.c.bf16 %v1769_v63, %v1768_v62  ;;  %v1752_v10 = vld [vmem:[%s6599_s3 + $0x830] sm:$0xff] }
 0x13c   :  { %4065 = vmatpush3.bf16.msra.mxu0 %v4064_v16  ;;  %v1765_v16 = vld [vmem:[%s6599_s3 + $0x898] sm:$0xff]  ;;  %v4120_v20 = vpack.c.bf16 %v1753_v13, %v1752_v10  ;;  %v1776_v10 = vld [vmem:[%s6599_s3 + $0x8f0] sm:$0xff] }
 0x13d   :  { %4097 = vmatpush3.bf16.msra.mxu1 %v4096_v29  ;;  %4067 = vmatprep.subr.bf16.mxu0 %v4066_v11  ;;  %v959_v29 = vadd.f32 %v5344_v23, %v229_v58  ;;  %v1470_v11 = vmax.f32 %v815_v59, 0.0  ;;  %v4110_v27 = vpack.c.bf16 %v1765_v16, %v1764_v2  ;;  %v1748_v23 = vld [vmem:[%s6599_s3 + $0x810] sm:$0xff]  ;;  %v1782_v58 = vld [vmem:[%s6599_s3 + $0x920] sm:$0xff]  ;;  %v1785_v2 = vld [vmem:[%s6599_s3 + $0x938] sm:$0xff] }
 0x13e   :  { %4099 = vmatprep.subr.bf16.mxu1 %v4098_v35  ;;  %v1472_v35 = vmax.f32 %v886_v0, 0.0  ;;  %v4112_v44 = vpack.c.bf16 %v1749_v28, %v1748_v23  ;;  %v1800_v0 = vld [vmem:[%s6599_s3 + $0x9b0] sm:$0xff]  ;;  %v1770_v16 = vld [vmem:[%s6599_s3 + $0x8c0] sm:$0xff]  ;;  %v1787_v28 = vld [vmem:[%s6599_s3 + $0x948] sm:$0xff] }
 0x13f   :  { %v1777_v13 = vld [vmem:[%s6599_s3 + $0x8f8] sm:$0xff] }
 0x140   :  { %4069 = vmatpush3.bf16.msra.mxu0 %v4068_v42  ;;  %v1767_v42 = vld [vmem:[%s6599_s3 + $0x8a8] sm:$0xff] }
 0x141   :  { %4101 = vmatpush3.bf16.msra.mxu1 %v4100_v40  ;;  %4071 = vmatprep.subr.bf16.mxu0 %v4070_v12  ;;  %v1475_v40 = vmax.f32 %v959_v29, 0.0  ;;  %v1798_v12 = vld [vmem:[%s6599_s3 + $0x9a0] sm:$0xff]  ;;  %v4114_v57 = vpack.c.bf16 %v1767_v42, %v1766_v39  ;;  %v1771_v29 = vld [vmem:[%s6599_s3 + $0x8c8] sm:$0xff]  ;;  %v1805_v39 = vld [vmem:[%s6599_s3 + $0x9d8] sm:$0xff] }
 0x142   :  { %4103 = vmatprep.subr.bf16.mxu1 %v4102_v17  ;;  %v4144_v17 = vpack.c.bf16 %v1781_v38, %v1780_v34  ;;  %v4146_v59 = vpack.c.bf16 %v1799_v53, %v1798_v12  ;;  %v1772_v34 = vld [vmem:[%s6599_s3 + $0x8d0] sm:$0xff] }
 0x143   :  { %v1804_v38 = vld [vmem:[%s6599_s3 + $0x9d0] sm:$0xff] }
 0x144   :  { %4073 = vmatpush3.bf16.msra.mxu0 %v4072_v47  ;;  %v1801_v47 = vld [vmem:[%s6599_s3 + $0x9b8] sm:$0xff]  ;;  %v1756_v53 = vld [vmem:[%s6599_s3 + $0x850] sm:$0xff] }
 0x145   :  { %4105 = vmatpush3.bf16.msra.mxu1 %v4104_v6  ;;  %4107 = vmatprep.subr.bf16.mxu0 %v4106_v8  ;;  %v4116_v6 = vpack.c.bf16 %v1751_v56, %v1750_v51  ;;  %v4148_v8 = vpack.c.bf16 %v1783_v60, %v1782_v58  ;;  %v4150_v15 = vpack.c.bf16 %v1801_v47, %v1800_v0  ;;  %v1774_v51 = vld [vmem:[%s6599_s3 + $0x8e0] sm:$0xff]  ;;  %v1775_v56 = vld [vmem:[%s6599_s3 + $0x8e8] sm:$0xff] }
 0x146   :  { %4139 = vmatprep.subr.bf16.mxu1 %v4138_v45  ;;  %v1784_v45 = vld [vmem:[%s6599_s3 + $0x930] sm:$0xff]  ;;  %v1806_v58 = vld [vmem:[%s6599_s3 + $0x9e0] sm:$0xff]  ;;  %v4130_v63 = vpack.c.bf16 %v1775_v56, %v1774_v51  ;;  %v1759_v47 = vld [vmem:[%s6599_s3 + $0x868] sm:$0xff] }
 0x147   :  { %2494 = vmatmul.mubr.f32.vlgmr.msra.gmra.mrb[22].mxu0 %v1470_v11  ;;  %v1802_v11 = vld [vmem:[%s6599_s3 + $0x9c0] sm:$0xff]  ;;  %v4152_v21 = vpack.c.bf16 %v1785_v2, %v1784_v45  ;;  %v225_v45 = vrot.slane %v5742_v26, %v5064_v46  ;;  %v1809_v2 = vld [vmem:[%s6599_s3 + $0x9f8] sm:$0xff] }
 0x148   :  { %2564 = vmatmul.mubr.f32.vlgmr.msra.gmra.mrb[22].mxu1 %v1472_v35  ;;  %4109 = vmatpush3.bf16.msra.mxu0 %v4108_v7  ;;  %v4122_v35 = vpack.c.bf16 %v1771_v29, %v1770_v16  ;;  %v1754_v7 = vld [vmem:[%s6599_s3 + $0x840] sm:$0xff]  ;;  %v4154_v23 = vpack.c.bf16 %v1803_v19, %v1802_v11  ;;  %v233_v16 = vrot.slane %v5742_v26, %v5072_v48  ;;  %v1829_v51 = vld [vmem:[%s6599_s3 + $0xa98] sm:$0xff] }
 0x149   :  { %4141 = vmatpush3.bf16.msra.mxu1 %v4140_v25  ;;  %4111 = vmatprep.subr.bf16.mxu0 %v4110_v27  ;;  %v1755_v25 = vld [vmem:[%s6599_s3 + $0x848] sm:$0xff]  ;;  %v1786_v27 = vld [vmem:[%s6599_s3 + $0x940] sm:$0xff]  ;;  %v4134_v19 = vpack.c.bf16 %v1777_v13, %v1776_v10  ;;  %v1845_v10 = vld [vmem:[%s6599_s3 + $0xb18] sm:$0xff] }
 0x14a   :  { %4143 = vmatprep.subr.bf16.mxu1 %v4142_v30  ;;  %2633 = vmatprep.mubr.f32.mxu0 %v1475_v40  ;;  %v1773_v30 = vld [vmem:[%s6599_s3 + $0x8d8] sm:$0xff]  ;;  %v4124_v42 = vpack.c.bf16 %v1755_v25, %v1754_v7  ;;  %v4156_v40 = vpack.c.bf16 %v1787_v28, %v1786_v27  ;;  %v1758_v0 = vld [vmem:[%s6599_s3 + $0x860] sm:$0xff]  ;;  %v245_v28 = vrot.slane %v5742_v26, %v5107_v4 }
 0x14b   :  { %2703 = vmatprep.mubr.f32.mxu1 %v1477_v43  ;;  %v4126_v12 = vpack.c.bf16 %v1773_v30, %v1772_v34  ;;  %v1757_v43 = vld [vmem:[%s6599_s3 + $0x858] sm:$0xff]  ;;  %v4132_v29 = vpack.c.bf16 %v1759_v47, %v1758_v0  ;;  %v1826_v27 = vld [vmem:[%s6599_s3 + $0xa80] sm:$0xff]  ;;  %v957_v34 = vadd.f32 %v5331_v18, %v225_v45  ;;  %v1831_v45 = vld [vmem:[%s6599_s3 + $0xaa8] sm:$0xff] }
 0x14c   :  { %4113 = vmatpush3.bf16.msra.mxu0 %v4112_v44  ;;  %v1788_v44 = vld [vmem:[%s6599_s3 + $0x950] sm:$0xff]  ;;  %v4128_v60 = vpack.c.bf16 %v1757_v43, %v1756_v53  ;;  %v1793_v25 = vld [vmem:[%s6599_s3 + $0x978] sm:$0xff]  ;;  %v1858_v30 = vld [vmem:[%s6599_s3 + $0xb80] sm:$0xff]  ;;  %v1101_v56 = vadd.f32 %v5402_v5, %v245_v28 }
 0x14d   :  { %4145 = vmatpush3.bf16.msra.mxu1 %v4144_v17  ;;  %4115 = vmatprep.subr.bf16.mxu0 %v4114_v57  ;;  %v4158_v17 = vpack.c.bf16 %v1805_v39, %v1804_v38  ;;  %v1789_v57 = vld [vmem:[%s6599_s3 + $0x958] sm:$0xff]  ;;  %v1859_v38 = vld [vmem:[%s6599_s3 + $0xb88] sm:$0xff]  ;;  %v253_v39 = vrot.slane %v5742_v26, %v5116_v9  ;;  %v1810_v18 = vld [vmem:[%s6599_s3 + $0xa00] sm:$0xff] }
 0x14e   :  { %4147 = vmatprep.subr.bf16.mxu1 %v4146_v59  ;;  %v1807_v59 = vld [vmem:[%s6599_s3 + $0x9e8] sm:$0xff]  ;;  %v4160_v62 = vpack.c.bf16 %v1789_v57, %v1788_v44  ;;  %v1842_v44 = vld [vmem:[%s6599_s3 + $0xb00] sm:$0xff]  ;;  %v1828_v57 = vld [vmem:[%s6599_s3 + $0xa90] sm:$0xff] }
 0x14f   :  { %v1811_v43 = vld [vmem:[%s6599_s3 + $0xa08] sm:$0xff]  ;;  %v1812_v5 = vld [vmem:[%s6599_s3 + $0xa10] sm:$0xff]  ;;  %v1830_v13 = vld [vmem:[%s6599_s3 + $0xaa0] sm:$0xff] }
 0x150   :  { %4117 = vmatpush3.bf16.msra.mxu0 %v4116_v6  ;;  %v1790_v6 = vld [vmem:[%s6599_s3 + $0x960] sm:$0xff]  ;;  %v4172_v0 = vpack.c.bf16 %v1811_v43, %v1810_v18  ;;  %v1833_v28 = vld [vmem:[%s6599_s3 + $0xab8] sm:$0xff] }
 0x151   :  { %4149 = vmatpush3.bf16.msra.mxu1 %v4148_v8  ;;  %4119 = vmatprep.subr.bf16.mxu0 %v4118_v37  ;;  %v4162_v8 = vpack.c.bf16 %v1807_v59, %v1806_v58  ;;  %v1791_v37 = vld [vmem:[%s6599_s3 + $0x968] sm:$0xff]  ;;  %v1474_v58 = vmax.f32 %v957_v34, 0.0  ;;  %v1860_v59 = vld [vmem:[%s6599_s3 + $0xb90] sm:$0xff]  ;;  %v1849_v43 = vld [vmem:[%s6599_s3 + $0xb38] sm:$0xff] }
 0x152   :  { %4151 = vmatprep.subr.bf16.mxu1 %v4150_v15  ;;  %v1808_v15 = vld [vmem:[%s6599_s3 + $0x9f0] sm:$0xff]  ;;  %v4164_v11 = vpack.c.bf16 %v1791_v37, %v1790_v6  ;;  %v4174_v6 = vpack.c.bf16 %v1829_v51, %v1828_v57  ;;  %v1867_v57 = vld [vmem:[%s6599_s3 + $0xbc8] sm:$0xff] }
 0x153   :  { %v4166_v7 = vpack.c.bf16 %v1809_v2, %v1808_v15  ;;  %v1844_v37 = vld [vmem:[%s6599_s3 + $0xb10] sm:$0xff]  ;;  %v1479_v15 = vmax.f32 %v1101_v56, 0.0  ;;  %v1862_v2 = vld [vmem:[%s6599_s3 + $0xba0] sm:$0xff] }
 0x154   :  { %4121 = vmatpush3.bf16.msra.mxu0 %v4120_v20  ;;  %v1760_v20 = vld [vmem:[%s6599_s3 + $0x870] sm:$0xff] }
 0x155   :  { %4153 = vmatpush3.bf16.msra.mxu1 %v4152_v21  ;;  %4123 = vmatprep.subr.bf16.mxu0 %v4122_v35  ;;  %v1761_v21 = vld [vmem:[%s6599_s3 + $0x878] sm:$0xff]  ;;  %v1792_v35 = vld [vmem:[%s6599_s3 + $0x970] sm:$0xff] }
 0x156   :  { %4155 = vmatprep.subr.bf16.mxu1 %v4154_v23  ;;  %v1827_v23 = vld [vmem:[%s6599_s3 + $0xa88] sm:$0xff]  ;;  %v1864_v34 = vld [vmem:[%s6599_s3 + $0xbb0] sm:$0xff] }
 0x157   :  { %v4170_v53 = vpack.c.bf16 %v1827_v23, %v1826_v27  ;;  %v1847_v27 = vld [vmem:[%s6599_s3 + $0xb28] sm:$0xff]  ;;  %v1832_v23 = vld [vmem:[%s6599_s3 + $0xab0] sm:$0xff] }
 0x158   :  { %4125 = vmatpush3.bf16.msra.mxu0 %v4124_v42  ;;  %v1028_v42 = vadd.f32 %v5342_v22, %v233_v16  ;;  %v4202_v22 = vpack.c.bf16 %v1859_v38, %v1858_v30  ;;  %v1863_v16 = vld [vmem:[%s6599_s3 + $0xba8] sm:$0xff]  ;;  %v1865_v30 = vld [vmem:[%s6599_s3 + $0xbb8] sm:$0xff] }
 0x159   :  { %4157 = vmatpush3.bf16.msra.mxu1 %v4156_v40  ;;  %4127 = vmatprep.subr.bf16.mxu0 %v4126_v12  ;;  %v4136_v40 = vpack.c.bf16 %v1761_v21, %v1760_v20  ;;  %v4168_v12 = vpack.c.bf16 %v1793_v25, %v1792_v35  ;;  %v4178_v20 = vpack.c.bf16 %v1831_v45, %v1830_v13  ;;  %v1814_v21 = vld [vmem:[%s6599_s3 + $0xa20] sm:$0xff]  ;;  %v1815_v35 = vld [vmem:[%s6599_s3 + $0xa28] sm:$0xff]  ;;  %v1820_v13 = vld [vmem:[%s6599_s3 + $0xa50] sm:$0xff] }
 0x15a   :  { %4159 = vmatprep.subr.bf16.mxu1 %v4158_v17  ;;  %v1843_v17 = vld [vmem:[%s6599_s3 + $0xb08] sm:$0xff]  ;;  %v4210_v25 = vpack.c.bf16 %v1863_v16, %v1862_v2  ;;  %v4180_v38 = vpack.c.bf16 %v1815_v35, %v1814_v21  ;;  %v4214_v18 = vpack.c.bf16 %v1865_v30, %v1864_v34  ;;  %v1821_v45 = vld [vmem:[%s6599_s3 + $0xa58] sm:$0xff]  ;;  %v1840_v30 = vld [vmem:[%s6599_s3 + $0xaf0] sm:$0xff] }
 0x15b   :  { %v4204_v47 = vpack.c.bf16 %v1843_v17, %v1842_v44  ;;  %v1834_v44 = vld [vmem:[%s6599_s3 + $0xac0] sm:$0xff]  ;;  %v1853_v16 = vld [vmem:[%s6599_s3 + $0xb58] sm:$0xff]  ;;  %v4192_v21 = vpack.c.bf16 %v1821_v45, %v1820_v13  ;;  %v1855_v34 = vld [vmem:[%s6599_s3 + $0xb68] sm:$0xff] }
 0x15c   :  { %4129 = vmatpush3.bf16.msra.mxu0 %v4128_v60  ;;  %v1861_v60 = vld [vmem:[%s6599_s3 + $0xb98] sm:$0xff]  ;;  %v1866_v17 = vld [vmem:[%s6599_s3 + $0xbc0] sm:$0xff] }
 0x15d   :  { %4161 = vmatpush3.bf16.msra.mxu1 %v4160_v62  ;;  %4131 = vmatprep.subr.bf16.mxu0 %v4130_v63  ;;  %v1172_v62 = vadd.f32 %v5413_v14, %v253_v39  ;;  %v1476_v63 = vmax.f32 %v1028_v42, 0.0  ;;  %v4206_v14 = vpack.c.bf16 %v1861_v60, %v1860_v59  ;;  %v4182_v42 = vpack.c.bf16 %v1833_v28, %v1832_v23  ;;  %v1818_v59 = vld [vmem:[%s6599_s3 + $0xa40] sm:$0xff]  ;;  %v1819_v60 = vld [vmem:[%s6599_s3 + $0xa48] sm:$0xff] }
 0x15e   :  { %4163 = vmatprep.subr.bf16.mxu1 %v4162_v8  ;;  %v1813_v8 = vld [vmem:[%s6599_s3 + $0xa18] sm:$0xff]  ;;  %v1854_v23 = vld [vmem:[%s6599_s3 + $0xb60] sm:$0xff] }
 0x160   :  { %4133 = vmatpush3.bf16.msra.mxu0 %v4132_v29  ;;  %v1481_v29 = vmax.f32 %v1172_v62, 0.0  ;;  %v1850_v62 = vld [vmem:[%s6599_s3 + $0xb40] sm:$0xff] }
 0x161   :  { %4165 = vmatpush3.bf16.msra.mxu1 %v4164_v11  ;;  %4135 = vmatprep.subr.bf16.mxu0 %v4134_v19  ;;  %v4176_v11 = vpack.c.bf16 %v1813_v8, %v1812_v5  ;;  %v4208_v19 = vpack.c.bf16 %v1845_v10, %v1844_v37  ;;  %v1868_v5 = vld [vmem:[%s6599_s3 + $0xbd0] sm:$0xff]  ;;  %v1869_v8 = vld [vmem:[%s6599_s3 + $0xbd8] sm:$0xff]  ;;  %v4188_v37 = vpack.c.bf16 %v1819_v60, %v1818_v59 }
 0x162   :  { %4167 = vmatprep.subr.bf16.mxu1 %v4166_v7  ;;  %v1846_v7 = vld [vmem:[%s6599_s3 + $0xb20] sm:$0xff]  ;;  %v4222_v2 = vpack.c.bf16 %v1869_v8, %v1868_v5  ;;  %v1875_v8 = vld [vmem:[%s6599_s3 + $0xc08] sm:$0xff] }
 0x163   :  { %v4212_v39 = vpack.c.bf16 %v1847_v27, %v1846_v7  ;;  %v1823_v27 = vld [vmem:[%s6599_s3 + $0xa68] sm:$0xff] }
 0x164   :  { %4137 = vmatpush3.bf16.msra.mxu0 %v4136_v40  ;;  %v1816_v40 = vld [vmem:[%s6599_s3 + $0xa30] sm:$0xff] }
 0x165   :  { %4169 = vmatpush3.bf16.msra.mxu1 %v4168_v12  ;;  %4171 = vmatprep.subr.bf16.mxu0 %v4170_v53  ;;  %v1817_v12 = vld [vmem:[%s6599_s3 + $0xa38] sm:$0xff]  ;;  %v1848_v53 = vld [vmem:[%s6599_s3 + $0xb30] sm:$0xff] }
 0x166   :  { %4203 = vmatprep.subr.bf16.mxu1 %v4202_v22  ;;  %v1835_v22 = vld [vmem:[%s6599_s3 + $0xac8] sm:$0xff]  ;;  %v4184_v51 = vpack.c.bf16 %v1817_v12, %v1816_v40  ;;  %v4216_v56 = vpack.c.bf16 %v1849_v43, %v1848_v53  ;;  %v1873_v40 = vld [vmem:[%s6599_s3 + $0xbf8] sm:$0xff]  ;;  %v249_v53 = vrot.slane %v5742_v26, %v5258_v36  ;;  %v4228_v43 = vpack.c.bf16 %v1855_v34, %v1854_v23 }
 0x167   :  { %2634 = vmatmul.mubr.f32.vlgmr.msra.gmra.mrb[24].mxu0 %v1474_v58  ;;  %v4186_v58 = vpack.c.bf16 %v1835_v22, %v1834_v44  ;;  %v6155_v12 = vld [vmem:[%s6598_s2 + $0x18] sm:$0xff]  ;;  %v1824_v22 = vld [vmem:[%s6599_s3 + $0xa70] sm:$0xff]  ;;  %v1927_v34 = vld [vmem:[%s6599_s3 + $0xda8] sm:$0xff] }
 0x168   :  { %2704 = vmatmul.mubr.f32.vlgmr.msra.gmra.mrb[24].mxu1 %v1476_v63  ;;  %4173 = vmatpush3.bf16.msra.mxu0 %v4172_v0  ;;  %v4218_v63 = vpack.c.bf16 %v1867_v57, %v1866_v17  ;;  %v1851_v0 = vld [vmem:[%s6599_s3 + $0xb48] sm:$0xff]  ;;  %v1825_v17 = vld [vmem:[%s6599_s3 + $0xa78] sm:$0xff]  ;;  %v1856_v57 = vld [vmem:[%s6599_s3 + $0xb70] sm:$0xff]  ;;  %v261_v59 = vrot.slane %v6155_v12, %v5075_v49 }
 0x169   :  { %4205 = vmatpush3.bf16.msra.mxu1 %v4204_v47  ;;  %4175 = vmatprep.subr.bf16.mxu0 %v4174_v6  ;;  %v1836_v47 = vld [vmem:[%s6599_s3 + $0xad0] sm:$0xff]  ;;  %v1837_v6 = vld [vmem:[%s6599_s3 + $0xad8] sm:$0xff] }
 0x16a   :  { %4207 = vmatprep.subr.bf16.mxu1 %v4206_v14  ;;  %2773 = vmatprep.mubr.f32.mxu0 %v1479_v15  ;;  %v4220_v14 = vpack.c.bf16 %v1851_v0, %v1850_v62  ;;  %v4190_v10 = vpack.c.bf16 %v1837_v6, %v1836_v47  ;;  %v1852_v15 = vld [vmem:[%s6599_s3 + $0xb50] sm:$0xff]  ;;  %v1922_v62 = vld [vmem:[%s6599_s3 + $0xd80] sm:$0xff]  ;;  %v269_v0 = vrot.slane %v6155_v12, %v5078_v50 }
 0x16b   :  { %2843 = vmatprep.mubr.f32.mxu1 %v1481_v29  ;;  %v1838_v29 = vld [vmem:[%s6599_s3 + $0xae0] sm:$0xff]  ;;  %v4224_v35 = vpack.c.bf16 %v1853_v16, %v1852_v15  ;;  %v1170_v47 = vadd.f32 %v5400_v3, %v249_v53  ;;  %v4200_v6 = vpack.c.bf16 %v1825_v17, %v1824_v22  ;;  %v1243_v13 = vadd.f32 %v5465_v52, %v261_v59  ;;  %v1924_v15 = vld [vmem:[%s6599_s3 + $0xd90] sm:$0xff]  ;;  %v1879_v53 = vld [vmem:[%s6599_s3 + $0xc28] sm:$0xff] }
 0x16c   :  { %4177 = vmatpush3.bf16.msra.mxu0 %v4176_v11  ;;  %v1839_v11 = vld [vmem:[%s6599_s3 + $0xae8] sm:$0xff]  ;;  %v1906_v50 = vld [vmem:[%s6599_s3 + $0xd00] sm:$0xff]  ;;  %v1314_v16 = vadd.f32 %v5484_v1, %v269_v0  ;;  %v1876_v52 = vld [vmem:[%s6599_s3 + $0xc10] sm:$0xff] }
 0x16d   :  { %4209 = vmatpush3.bf16.msra.mxu1 %v4208_v19  ;;  %4179 = vmatprep.subr.bf16.mxu0 %v4178_v20  ;;  %v1870_v19 = vld [vmem:[%s6599_s3 + $0xbe0] sm:$0xff]  ;;  %v1871_v20 = vld [vmem:[%s6599_s3 + $0xbe8] sm:$0xff]  ;;  %v4194_v7 = vpack.c.bf16 %v1839_v11, %v1838_v29  ;;  %v1480_v29 = vmax.f32 %v1170_v47, 0.0  ;;  %v1483_v23 = vmax.f32 %v1243_v13, 0.0  ;;  %v1896_v22 = vld [vmem:[%s6599_s3 + $0xcb0] sm:$0xff] }
 0x16e   :  { %4211 = vmatprep.subr.bf16.mxu1 %v4210_v25  ;;  %v1822_v25 = vld [vmem:[%s6599_s3 + $0xa60] sm:$0xff]  ;;  %v4226_v28 = vpack.c.bf16 %v1871_v20, %v1870_v19  ;;  %v1897_v17 = vld [vmem:[%s6599_s3 + $0xcb8] sm:$0xff]  ;;  %v1880_v59 = vld [vmem:[%s6599_s3 + $0xc30] sm:$0xff] }
 0x16f   :  { %v1913_v0 = vld [vmem:[%s6599_s3 + $0xd38] sm:$0xff]  ;;  %v1898_v47 = vld [vmem:[%s6599_s3 + $0xcc0] sm:$0xff]  ;;  %v1915_v13 = vld [vmem:[%s6599_s3 + $0xd48] sm:$0xff] }
 0x170   :  { %4181 = vmatpush3.bf16.msra.mxu0 %v4180_v38  ;;  %v1841_v38 = vld [vmem:[%s6599_s3 + $0xaf8] sm:$0xff] }
 0x171   :  { %4213 = vmatpush3.bf16.msra.mxu1 %v4212_v39  ;;  %4183 = vmatprep.subr.bf16.mxu0 %v4182_v42  ;;  %v241_v39 = vrot.slane %v5742_v26, %v5255_v33  ;;  %v1872_v42 = vld [vmem:[%s6599_s3 + $0xbf0] sm:$0xff]  ;;  %v4198_v44 = vpack.c.bf16 %v1841_v38, %v1840_v30  ;;  %v1857_v26 = vld [vmem:[%s6599_s3 + $0xb78] sm:$0xff]  ;;  %v1485_v30 = vmax.f32 %v1314_v16, 0.0 }
 0x172   :  { %4215 = vmatprep.subr.bf16.mxu1 %v4214_v18  ;;  %v4196_v18 = vpack.c.bf16 %v1823_v27, %v1822_v25  ;;  %v4232_v49 = vpack.c.bf16 %v1857_v26, %v1856_v57  ;;  %v1894_v25 = vld [vmem:[%s6599_s3 + $0xca0] sm:$0xff]  ;;  %v1895_v27 = vld [vmem:[%s6599_s3 + $0xca8] sm:$0xff]  ;;  %v1928_v57 = vld [vmem:[%s6599_s3 + $0xdb0] sm:$0xff] }
 0x173   :  { %v1099_v60 = vadd.f32 %v5389_v61, %v241_v39  ;;  %v1874_v61 = vld [vmem:[%s6599_s3 + $0xc00] sm:$0xff]  ;;  %v1933_v16 = vld [vmem:[%s6599_s3 + $0xdd8] sm:$0xff] }
 0x174   :  { %4185 = vmatpush3.bf16.msra.mxu0 %v4184_v51  ;;  %v4230_v51 = vpack.c.bf16 %v1873_v40, %v1872_v42  ;;  %v4236_v11 = vpack.c.bf16 %v1875_v8, %v1874_v61  ;;  %v4242_v42 = vpack.c.bf16 %v1895_v27, %v1894_v25  ;;  %v1878_v40 = vld [vmem:[%s6599_s3 + $0xc20] sm:$0xff]  ;;  %v1903_v25 = vld [vmem:[%s6599_s3 + $0xce8] sm:$0xff] }
 0x175   :  { %4217 = vmatpush3.bf16.msra.mxu1 %v4216_v56  ;;  %4187 = vmatprep.subr.bf16.mxu0 %v4186_v58  ;;  %v1890_v56 = vld [vmem:[%s6599_s3 + $0xc80] sm:$0xff]  ;;  %v1891_v58 = vld [vmem:[%s6599_s3 + $0xc88] sm:$0xff]  ;;  %v1478_v45 = vmax.f32 %v1099_v60, 0.0  ;;  %v4244_v26 = vpack.c.bf16 %v1879_v53, %v1878_v40  ;;  %v1881_v60 = vld [vmem:[%s6599_s3 + $0xc38] sm:$0xff] }
 0x176   :  { %4219 = vmatprep.subr.bf16.mxu1 %v4218_v63  ;;  %v1923_v63 = vld [vmem:[%s6599_s3 + $0xd88] sm:$0xff]  ;;  %v4234_v5 = vpack.c.bf16 %v1891_v58, %v1890_v56  ;;  %v4246_v58 = vpack.c.bf16 %v1897_v17, %v1896_v22  ;;  %v4248_v61 = vpack.c.bf16 %v1881_v60, %v1880_v59  ;;  %v1934_v27 = vld [vmem:[%s6599_s3 + $0xde0] sm:$0xff]  ;;  %v1937_v22 = vld [vmem:[%s6599_s3 + $0xdf8] sm:$0xff]  ;;  %v265_v60 = vrot.slane %v6155_v12, %v5072_v48 }
 0x177   :  { %v4266_v3 = vpack.c.bf16 %v1923_v63, %v1922_v62  ;;  %v1912_v62 = vld [vmem:[%s6599_s3 + $0xd30] sm:$0xff]  ;;  %v1919_v53 = vld [vmem:[%s6599_s3 + $0xd68] sm:$0xff]  ;;  %v1986_v48 = vld [vmem:[%s6599_s3 + $0xf80] sm:$0xff] }
 0x178   :  { %4189 = vmatpush3.bf16.msra.mxu0 %v4188_v37  ;;  %v1907_v37 = vld [vmem:[%s6599_s3 + $0xd08] sm:$0xff]  ;;  %v4280_v8 = vpack.c.bf16 %v1913_v0, %v1912_v62  ;;  %v1920_v59 = vld [vmem:[%s6599_s3 + $0xd70] sm:$0xff]  ;;  %v1921_v62 = vld [vmem:[%s6599_s3 + $0xd78] sm:$0xff] }
 0x179   :  { %4221 = vmatpush3.bf16.msra.mxu1 %v4220_v14  ;;  %4191 = vmatprep.subr.bf16.mxu0 %v4190_v10  ;;  %v1892_v14 = vld [vmem:[%s6599_s3 + $0xc90] sm:$0xff]  ;;  %v1893_v10 = vld [vmem:[%s6599_s3 + $0xc98] sm:$0xff]  ;;  %v4268_v19 = vpack.c.bf16 %v1907_v37, %v1906_v50  ;;  %v1883_v37 = vld [vmem:[%s6599_s3 + $0xc48] sm:$0xff] }
 0x17a   :  { %4223 = vmatprep.subr.bf16.mxu1 %v4222_v2  ;;  %v1925_v2 = vld [vmem:[%s6599_s3 + $0xd98] sm:$0xff]  ;;  %v4238_v20 = vpack.c.bf16 %v1893_v10, %v1892_v14  ;;  %v1914_v14 = vld [vmem:[%s6599_s3 + $0xd40] sm:$0xff]  ;;  %v1955_v0 = vld [vmem:[%s6599_s3 + $0xe88] sm:$0xff] }
 0x17b   :  { %v4270_v1 = vpack.c.bf16 %v1925_v2, %v1924_v15  ;;  %v1901_v15 = vld [vmem:[%s6599_s3 + $0xcd8] sm:$0xff]  ;;  %v1932_v2 = vld [vmem:[%s6599_s3 + $0xdd0] sm:$0xff] }
 0x17c   :  { %4193 = vmatpush3.bf16.msra.mxu0 %v4192_v21  ;;  %v1877_v21 = vld [vmem:[%s6599_s3 + $0xc18] sm:$0xff] }
 0x17d   :  { %4225 = vmatpush3.bf16.msra.mxu1 %v4224_v35  ;;  %4195 = vmatprep.subr.bf16.mxu0 %v4194_v7  ;;  %v1908_v35 = vld [vmem:[%s6599_s3 + $0xd10] sm:$0xff]  ;;  %v1909_v7 = vld [vmem:[%s6599_s3 + $0xd18] sm:$0xff]  ;;  %v4240_v38 = vpack.c.bf16 %v1877_v21, %v1876_v52 }
 0x17e   :  { %4227 = vmatprep.subr.bf16.mxu1 %v4226_v28  ;;  %v1926_v28 = vld [vmem:[%s6599_s3 + $0xda0] sm:$0xff]  ;;  %v4272_v39 = vpack.c.bf16 %v1909_v7, %v1908_v35  ;;  %v1885_v52 = vld [vmem:[%s6599_s3 + $0xc58] sm:$0xff]  ;;  %v1916_v21 = vld [vmem:[%s6599_s3 + $0xd50] sm:$0xff]  ;;  %v4286_v35 = vpack.c.bf16 %v1933_v16, %v1932_v2 }
 0x17f   :  { %v1902_v7 = vld [vmem:[%s6599_s3 + $0xce0] sm:$0xff]  ;;  %v1988_v2 = vld [vmem:[%s6599_s3 + $0xf90] sm:$0xff] }
 0x180   :  { %4197 = vmatpush3.bf16.msra.mxu0 %v4196_v18  ;;  %v1910_v18 = vld [vmem:[%s6599_s3 + $0xd20] sm:$0xff] }
 0x181   :  { %4229 = vmatpush3.bf16.msra.mxu1 %v4228_v43  ;;  %4199 = vmatprep.subr.bf16.mxu0 %v4198_v44  ;;  %v4274_v43 = vpack.c.bf16 %v1927_v34, %v1926_v28  ;;  %v1911_v44 = vld [vmem:[%s6599_s3 + $0xd28] sm:$0xff] }
 0x182   :  { %4231 = vmatprep.subr.bf16.mxu1 %v4230_v51  ;;  %v1929_v51 = vld [vmem:[%s6599_s3 + $0xdb8] sm:$0xff]  ;;  %v4276_v56 = vpack.c.bf16 %v1911_v44, %v1910_v18  ;;  %v1904_v18 = vld [vmem:[%s6599_s3 + $0xcf0] sm:$0xff] }
 0x183   :  { %v4278_v63 = vpack.c.bf16 %v1929_v51, %v1928_v57  ;;  %v1936_v44 = vld [vmem:[%s6599_s3 + $0xdf0] sm:$0xff]  ;;  %v257_v57 = vrot.slane %v6155_v12, %v5064_v46 }
 0x184   :  { %4201 = vmatpush3.bf16.msra.mxu0 %v4200_v6  ;;  %v1899_v6 = vld [vmem:[%s6599_s3 + $0xcc8] sm:$0xff]  ;;  %v4294_v46 = vpack.c.bf16 %v1937_v22, %v1936_v44  ;;  %v1961_v44 = vld [vmem:[%s6599_s3 + $0xeb8] sm:$0xff]  ;;  %v1992_v22 = vld [vmem:[%s6599_s3 + $0xfb0] sm:$0xff] }
 0x185   :  { %4233 = vmatpush3.bf16.msra.mxu1 %v4232_v49  ;;  %4235 = vmatprep.subr.bf16.mxu0 %v4234_v5  ;;  %v1930_v49 = vld [vmem:[%s6599_s3 + $0xdc0] sm:$0xff]  ;;  %v1931_v5 = vld [vmem:[%s6599_s3 + $0xdc8] sm:$0xff]  ;;  %v4250_v50 = vpack.c.bf16 %v1899_v6, %v1898_v47  ;;  %v277_v47 = vrot.slane %v6155_v12, %v5107_v4 }
 0x186   :  { %4267 = vmatprep.subr.bf16.mxu1 %v4266_v3  ;;  %v1882_v3 = vld [vmem:[%s6599_s3 + $0xc40] sm:$0xff]  ;;  %v4282_v10 = vpack.c.bf16 %v1931_v5, %v1930_v49  ;;  %v1987_v6 = vld [vmem:[%s6599_s3 + $0xf88] sm:$0xff]  ;;  %v285_v49 = vrot.slane %v6155_v12, %v5116_v9 }
 0x187   :  { %2774 = vmatmul.mubr.f32.vlgmr.msra.gmra.mrb[26].mxu0 %v1478_v45  ;;  %v1900_v45 = vld [vmem:[%s6599_s3 + $0xcd0] sm:$0xff]  ;;  %v1938_v4 = vld [vmem:[%s6599_s3 + $0xe00] sm:$0xff]  ;;  %v4330_v9 = vpack.c.bf16 %v1987_v6, %v1986_v48 }
 0x188   :  { %2844 = vmatmul.mubr.f32.vlgmr.msra.gmra.mrb[26].mxu1 %v1480_v29  ;;  %4237 = vmatpush3.bf16.msra.mxu0 %v4236_v11  ;;  %v4252_v29 = vpack.c.bf16 %v1883_v37, %v1882_v3  ;;  %v4284_v11 = vpack.c.bf16 %v1915_v13, %v1914_v14  ;;  %v1939_v3 = vld [vmem:[%s6599_s3 + $0xe08] sm:$0xff]  ;;  %v1312_v37 = vadd.f32 %v5467_v54, %v265_v60  ;;  %v1956_v13 = vld [vmem:[%s6599_s3 + $0xe90] sm:$0xff]  ;;  %v1957_v54 = vld [vmem:[%s6599_s3 + $0xe98] sm:$0xff] }
 0x189   :  { %4269 = vmatpush3.bf16.msra.mxu1 %v4268_v19  ;;  %4239 = vmatprep.subr.bf16.mxu0 %v4238_v20  ;;  %v4254_v19 = vpack.c.bf16 %v1901_v15, %v1900_v45  ;;  %v1884_v20 = vld [vmem:[%s6599_s3 + $0xc50] sm:$0xff]  ;;  %v1971_v14 = vld [vmem:[%s6599_s3 + $0xf08] sm:$0xff]  ;;  %v1456_v45 = vadd.f32 %v5544_v55, %v285_v49  ;;  %v4300_v15 = vpack.c.bf16 %v1939_v3, %v1938_v4  ;;  %v1941_v55 = vld [vmem:[%s6599_s3 + $0xe18] sm:$0xff] }
 0x18a   :  { %4271 = vmatprep.subr.bf16.mxu1 %v4270_v1  ;;  %2913 = vmatprep.mubr.f32.mxu0 %v1483_v23  ;;  %v1917_v1 = vld [vmem:[%s6599_s3 + $0xd58] sm:$0xff]  ;;  %v1935_v23 = vld [vmem:[%s6599_s3 + $0xde8] sm:$0xff]  ;;  %v4256_v28 = vpack.c.bf16 %v1885_v52, %v1884_v20  ;;  %v1484_v20 = vmax.f32 %v1312_v37, 0.0  ;;  %v4302_v52 = vpack.c.bf16 %v1957_v54, %v1956_v13  ;;  %v1964_v3 = vld [vmem:[%s6599_s3 + $0xed0] sm:$0xff] }
 0x18b   :  { %2983 = vmatprep.mubr.f32.mxu1 %v1485_v30  ;;  %v4288_v34 = vpack.c.bf16 %v1917_v1, %v1916_v21  ;;  %v4258_v30 = vpack.c.bf16 %v1903_v25, %v1902_v7  ;;  %v4290_v40 = vpack.c.bf16 %v1935_v23, %v1934_v27  ;;  %v1973_v21 = vld [vmem:[%s6599_s3 + $0xf18] sm:$0xff]  ;;  %v1959_v1 = vld [vmem:[%s6599_s3 + $0xea8] sm:$0xff]  ;;  %v1990_v27 = vld [vmem:[%s6599_s3 + $0xfa0] sm:$0xff] }
 0x18c   :  { %4241 = vmatpush3.bf16.msra.mxu0 %v4240_v38  ;;  %v1886_v38 = vld [vmem:[%s6599_s3 + $0xc60] sm:$0xff]  ;;  %v1991_v23 = vld [vmem:[%s6599_s3 + $0xfa8] sm:$0xff]  ;;  %v1965_v37 = vld [vmem:[%s6599_s3 + $0xed8] sm:$0xff] }
 0x18d   :  { %4273 = vmatpush3.bf16.msra.mxu1 %v4272_v39  ;;  %4243 = vmatprep.subr.bf16.mxu0 %v4242_v42  ;;  %v1887_v39 = vld [vmem:[%s6599_s3 + $0xc68] sm:$0xff]  ;;  %v1918_v42 = vld [vmem:[%s6599_s3 + $0xd60] sm:$0xff]  ;;  %v4318_v13 = vpack.c.bf16 %v1965_v37, %v1964_v3  ;;  %v1948_v54 = vld [vmem:[%s6599_s3 + $0xe50] sm:$0xff] }
 0x18e   :  { %4275 = vmatprep.subr.bf16.mxu1 %v4274_v43  ;;  %v1905_v43 = vld [vmem:[%s6599_s3 + $0xcf8] sm:$0xff]  ;;  %v4260_v17 = vpack.c.bf16 %v1887_v39, %v1886_v38  ;;  %v4292_v51 = vpack.c.bf16 %v1919_v53, %v1918_v42  ;;  %v1942_v39 = vld [vmem:[%s6599_s3 + $0xe20] sm:$0xff]  ;;  %v1943_v42 = vld [vmem:[%s6599_s3 + $0xe28] sm:$0xff]  ;;  %v4338_v53 = vpack.c.bf16 %v1991_v23, %v1990_v27 }
 0x18f   :  { %v1979_v4 = vld [vmem:[%s6599_s3 + $0xf48] sm:$0xff]  ;;  %v1968_v23 = vld [vmem:[%s6599_s3 + $0xef0] sm:$0xff] }
 0x190   :  { %4245 = vmatpush3.bf16.msra.mxu0 %v4244_v26  ;;  %v4262_v26 = vpack.c.bf16 %v1905_v43, %v1904_v18  ;;  %v1975_v18 = vld [vmem:[%s6599_s3 + $0xf28] sm:$0xff]  ;;  %v1960_v43 = vld [vmem:[%s6599_s3 + $0xeb0] sm:$0xff] }
 0x191   :  { %4277 = vmatpush3.bf16.msra.mxu1 %v4276_v56  ;;  %4247 = vmatprep.subr.bf16.mxu0 %v4246_v58  ;;  %v1888_v56 = vld [vmem:[%s6599_s3 + $0xc70] sm:$0xff]  ;;  %v1889_v58 = vld [vmem:[%s6599_s3 + $0xc78] sm:$0xff]  ;;  %v1983_v27 = vld [vmem:[%s6599_s3 + $0xf68] sm:$0xff] }
 0x192   :  { %4279 = vmatprep.subr.bf16.mxu1 %v4278_v63  ;;  %v1954_v63 = vld [vmem:[%s6599_s3 + $0xe80] sm:$0xff]  ;;  %v4264_v5 = vpack.c.bf16 %v1889_v58, %v1888_v56  ;;  %v1944_v56 = vld [vmem:[%s6599_s3 + $0xe30] sm:$0xff]  ;;  %v1945_v58 = vld [vmem:[%s6599_s3 + $0xe38] sm:$0xff] }
 0x193   :  { %v4312_v48 = vpack.c.bf16 %v1945_v58, %v1944_v56  ;;  %v1984_v58 = vld [vmem:[%s6599_s3 + $0xf70] sm:$0xff] }
 0x194   :  { %4249 = vmatpush3.bf16.msra.mxu0 %v4248_v61  ;;  %v1241_v61 = vadd.f32 %v5454_v41, %v257_v57  ;;  %v1970_v41 = vld [vmem:[%s6599_s3 + $0xf00] sm:$0xff]  ;;  %v4308_v57 = vpack.c.bf16 %v1943_v42, %v1942_v39  ;;  %v2000_v39 = vld [vmem:[%s6599_s3 + $0xff0] sm:$0xff]  ;;  %v2001_v42 = vld [vmem:[%s6599_s3 + $0xff8] sm:$0xff] }
 0x195   :  { %4281 = vmatpush3.bf16.msra.mxu1 %v4280_v8  ;;  %4251 = vmatprep.subr.bf16.mxu0 %v4250_v50  ;;  %v4296_v8 = vpack.c.bf16 %v1921_v62, %v1920_v59  ;;  %v4298_v50 = vpack.c.bf16 %v1955_v0, %v1954_v63  ;;  %v1976_v59 = vld [vmem:[%s6599_s3 + $0xf30] sm:$0xff]  ;;  %v1962_v62 = vld [vmem:[%s6599_s3 + $0xec0] sm:$0xff]  ;;  %v1963_v63 = vld [vmem:[%s6599_s3 + $0xec8] sm:$0xff]  ;;  %v4358_v56 = vpack.c.bf16 %v2001_v42, %v2000_v39 }
 0x196   :  { %4283 = vmatprep.subr.bf16.mxu1 %v4282_v10  ;;  %v1385_v10 = vadd.f32 %v5521_v31, %v277_v47  ;;  %v1989_v31 = vld [vmem:[%s6599_s3 + $0xf98] sm:$0xff]  ;;  %v1482_v16 = vmax.f32 %v1241_v61, 0.0  ;;  %v1994_v0 = vld [vmem:[%s6599_s3 + $0xfc0] sm:$0xff]  ;;  %v1995_v47 = vld [vmem:[%s6599_s3 + $0xfc8] sm:$0xff]  ;;  %v4314_v49 = vpack.c.bf16 %v1963_v63, %v1962_v62 }
 0x197   :  { %v4334_v25 = vpack.c.bf16 %v1989_v31, %v1988_v2  ;;  %v1947_v61 = vld [vmem:[%s6599_s3 + $0xe48] sm:$0xff]  ;;  %v1981_v31 = vld [vmem:[%s6599_s3 + $0xf58] sm:$0xff] }
 0x198   :  { %4253 = vmatpush3.bf16.msra.mxu0 %v4252_v29  ;;  %v4332_v29 = vpack.c.bf16 %v1971_v14, %v1970_v41  ;;  %v1487_v7 = vmax.f32 %v1385_v10, 0.0  ;;  %v1997_v41 = vld [vmem:[%s6599_s3 + $0xfd8] sm:$0xff] }
 0x199   :  { %4285 = vmatpush3.bf16.msra.mxu1 %v4284_v11  ;;  %4255 = vmatprep.subr.bf16.mxu0 %v4254_v19  ;;  %v1940_v11 = vld [vmem:[%s6599_s3 + $0xe10] sm:$0xff] }
 0x19a   :  { %4287 = vmatprep.subr.bf16.mxu1 %v4286_v35  ;;  %v1972_v19 = vld [vmem:[%s6599_s3 + $0xf10] sm:$0xff]  ;;  %v1958_v35 = vld [vmem:[%s6599_s3 + $0xea0] sm:$0xff] }
 0x19b   :  { %v4306_v38 = vpack.c.bf16 %v1959_v1, %v1958_v35  ;;  %v1951_v35 = vld [vmem:[%s6599_s3 + $0xe68] sm:$0xff]  ;;  %v1982_v1 = vld [vmem:[%s6599_s3 + $0xf60] sm:$0xff] }
 0x19c   :  { %4257 = vmatpush3.bf16.msra.mxu0 %v4256_v28  ;;  %v1489_v28 = vmax.f32 %v1456_v45, 0.0  ;;  %v1949_v45 = vld [vmem:[%s6599_s3 + $0xe58] sm:$0xff] }
 0x19d   :  { %4289 = vmatpush3.bf16.msra.mxu1 %v4288_v34  ;;  %4259 = vmatprep.subr.bf16.mxu0 %v4258_v30  ;;  %v4304_v34 = vpack.c.bf16 %v1941_v55, %v1940_v11  ;;  %v4336_v30 = vpack.c.bf16 %v1973_v21, %v1972_v19  ;;  %v1998_v11 = vld [vmem:[%s6599_s3 + $0xfe0] sm:$0xff]  ;;  %v1999_v55 = vld [vmem:[%s6599_s3 + $0xfe8] sm:$0xff]  ;;  %v4320_v19 = vpack.c.bf16 %v1949_v45, %v1948_v54 }
 0x19e   :  { %4291 = vmatprep.subr.bf16.mxu1 %v4290_v40  ;;  %v1974_v40 = vld [vmem:[%s6599_s3 + $0xf20] sm:$0xff] }
 0x19f   :  { %v1950_v21 = vld [vmem:[%s6599_s3 + $0xe60] sm:$0xff] }
 0x1a0   :  { %4261 = vmatpush3.bf16.msra.mxu0 %v4260_v17  ;;  %v1993_v17 = vld [vmem:[%s6599_s3 + $0xfb8] sm:$0xff] }
 0x1a1   :  { %4293 = vmatpush3.bf16.msra.mxu1 %v4292_v51  ;;  %4263 = vmatprep.subr.bf16.mxu0 %v4262_v26  ;;  %v4340_v51 = vpack.c.bf16 %v1975_v18, %v1974_v40  ;;  %v4310_v26 = vpack.c.bf16 %v1961_v44, %v1960_v43  ;;  %v4342_v60 = vpack.c.bf16 %v1993_v17, %v1992_v22 }
 0x1a2   :  { %4295 = vmatprep.subr.bf16.mxu1 %v4294_v46  ;;  %v1977_v46 = vld [vmem:[%s6599_s3 + $0xf38] sm:$0xff]  ;;  %v273_v40 = vrot.slane %v6155_v12, %v5255_v33  ;;  %v4324_v43 = vpack.c.bf16 %v1951_v35, %v1950_v21  ;;  %v4356_v22 = vpack.c.bf16 %v1983_v27, %v1982_v1  ;;  %v281_v33 = vrot.slane %v6155_v12, %v5258_v36 }
 0x1a3   :  { %v4344_v6 = vpack.c.bf16 %v1977_v46, %v1976_v59  ;;  %v1985_v59 = vld [vmem:[%s6599_s3 + $0xf78] sm:$0xff] }
 0x1a4   :  { %4265 = vmatpush3.bf16.msra.mxu0 %v4264_v5  ;;  %v1946_v5 = vld [vmem:[%s6599_s3 + $0xe40] sm:$0xff]  ;;  %v1383_v62 = vadd.f32 %v5510_v24, %v273_v40  ;;  %v4360_v63 = vpack.c.bf16 %v1985_v59, %v1984_v58  ;;  %v1454_v36 = vadd.f32 %v5523_v32, %v281_v33 }
 0x1a5   :  { %4297 = vmatpush3.bf16.msra.mxu1 %v4296_v8  ;;  %4299 = vmatprep.subr.bf16.mxu0 %v4298_v50  ;;  %v1978_v8 = vld [vmem:[%s6599_s3 + $0xf40] sm:$0xff]  ;;  %v4346_v50 = vpack.c.bf16 %v1995_v47, %v1994_v0  ;;  %v4316_v14 = vpack.c.bf16 %v1947_v61, %v1946_v5 }
 0x1a6   :  { %4331 = vmatprep.subr.bf16.mxu1 %v4330_v9  ;;  %v1996_v9 = vld [vmem:[%s6599_s3 + $0xfd0] sm:$0xff]  ;;  %v4348_v10 = vpack.c.bf16 %v1979_v4, %v1978_v8  ;;  %v1486_v12 = vmax.f32 %v1383_v62, 0.0  ;;  %v1488_v0 = vmax.f32 %v1454_v36, 0.0 }
 0x1a7   :  { %2914 = vmatmul.mubr.f32.vlgmr.msra.gmra.mrb[28].mxu0 %v1482_v16  ;;  %v4350_v2 = vpack.c.bf16 %v1997_v41, %v1996_v9  ;;  %v1966_v16 = vld [vmem:[%s6599_s3 + $0xee0] sm:$0xff] }
 0x1a8   :  { %2984 = vmatmul.mubr.f32.vlgmr.msra.gmra.mrb[28].mxu1 %v1484_v20  ;;  %4301 = vmatpush3.bf16.msra.mxu0 %v4300_v15  ;;  %v1980_v15 = vld [vmem:[%s6599_s3 + $0xf50] sm:$0xff] }
 0x1a9   :  { %3053 = vmatprep.mubr.f32.mxu0 %v1487_v7  ;;  %4333 = vmatpush3.bf16.msra.mxu1 %v4332_v29  ;;  %v1967_v29 = vld [vmem:[%s6599_s3 + $0xee8] sm:$0xff]  ;;  %v4352_v20 = vpack.c.bf16 %v1981_v31, %v1980_v15 }
 0x1aa   :  { %3123 = vmatprep.mubr.f32.mxu1 %v1489_v28  ;;  %4303 = vmatprep.subr.bf16.mxu0 %v4302_v52  ;;  %v4322_v52 = vpack.c.bf16 %v1967_v29, %v1966_v16  ;;  %v1969_v28 = vld [vmem:[%s6599_s3 + $0xef8] sm:$0xff] }
 0x1ab   :  { %4335 = vmatprep.subr.bf16.mxu1 %v4334_v25  ;;  %v4354_v25 = vpack.c.bf16 %v1999_v55, %v1998_v11  ;;  %v4326_v17 = vpack.c.bf16 %v1969_v28, %v1968_v23 }
 0x1ac   :  { %4305 = vmatpush3.bf16.msra.mxu0 %v4304_v34 }
 0x1ad   :  { %4337 = vmatpush3.bf16.msra.mxu1 %v4336_v30  ;;  %4307 = vmatprep.subr.bf16.mxu0 %v4306_v38  ;;  %v3161_v30 = vld [vmem:[%s6600_s4] ss:$0 sm:$0xff] }
 0x1ae   :  { %4339 = vmatprep.subr.bf16.mxu1 %v4338_v53 }
 0x1b0   :  { %4309 = vmatpush3.bf16.msra.mxu0 %v4308_v57  ;;  %v1952_v57 = vld [vmem:[%s6599_s3 + $0xe70] sm:$0xff] }
 0x1b1   :  { %4341 = vmatpush3.bf16.msra.mxu1 %v4340_v51  ;;  %4311 = vmatprep.subr.bf16.mxu0 %v4310_v26  ;;  %v1953_v51 = vld [vmem:[%s6599_s3 + $0xe78] sm:$0xff]  ;;  %s4389_s3 = smov [#allocation2]  }
 0x1b2   :  { %4343 = vmatprep.subr.bf16.mxu1 %v4342_v60  ;;  %v4328_v46 = vpack.c.bf16 %v1953_v51, %v1952_v57  ;;  %s3137_s14 = sshll.u32 %s4389_s3, 4  ;;  %s3138_s14 = int_to_ptr.vmem [resolvable:$true] %s3137_s14 }
 0x1b3   :  { %s4364_s15 = scalar_lea.vmem %s3138_s14, 128  ;;  %p4369_p1 = scmp.lt.s32.totalorder %s3138_s14, %s3138_s14 }
 0x1b4   :  { %4313 = vmatpush3.bf16.msra.mxu0 %v4312_v48  ;;  %p4365_p0 = scmp.ne.s32.totalorder %s3138_s14, %s4364_s15  ;;  %p4370_p2 = scmp.lt.s32.totalorder %s4364_s15, %s4364_s15 }
 0x1b5   :  { %4345 = vmatpush3.bf16.msra.mxu1 %v4344_v6  ;;  %4315 = vmatprep.subr.bf16.mxu0 %v4314_v49 }
 0x1b6   :  { %4347 = vmatprep.subr.bf16.mxu1 %v4346_v50  ;;  %p4371_p3 = por %p4370_p2, %p4369_p1 }
 0x1b8   :  { %4317 = vmatpush3.bf16.msra.mxu0 %v4316_v14  ;;  %p4372_p4 = pnand %p4371_p3, %p4365_p0 }
 0x1b9   :  { %4349 = vmatpush3.bf16.msra.mxu1 %v4348_v10  ;;  %4319 = vmatprep.subr.bf16.mxu0 %v4318_v13 }
 0x1ba   :  { %v3194_v7 = vpop.f32.mrb[16].mxu0  ;;  %4351 = vmatprep.subr.bf16.mxu1 %v4350_v2 }
 0x1bb   :  { %v3229_v34 = vpop.f32.mrb[16].mxu1  ;;  %v3195_v38 = vpop.f32.mrb[17].mxu0 }
 0x1bc   :  { %v3196_v53 = vadd.f32 %v3195_v38, %v3194_v7  ;;  %v3230_v18 = vpop.f32.mrb[17].mxu1  ;;  %4321 = vmatpush3.bf16.msra.mxu0 %v4320_v19 }
 0x1bd   :  { %v3231_v44 = vadd.f32 %v3230_v18, %v3229_v34  ;;  %4353 = vmatpush3.bf16.msra.mxu1 %v4352_v20  ;;  %4323 = vmatprep.subr.bf16.mxu0 %v4322_v52 }
 0x1be   :  { %v2076_v26 = vadd.f32 %v3196_v53, %v3161_v30  ;;  %4355 = vmatprep.subr.bf16.mxu1 %v4354_v25 }
 0x1c0   :  { %v2146_v60 = vadd.f32 %v3231_v44, %v2076_v26  ;;  %4325 = vmatpush3.bf16.msra.mxu0 %v4324_v43 }
 0x1c1   :  { %4357 = vmatpush3.bf16.msra.mxu1 %v4356_v22  ;;  %4327 = vmatprep.subr.bf16.mxu0 %v4326_v17 }
 0x1c2   :  { %4359 = vmatprep.subr.bf16.mxu1 %v4358_v56 }
 0x1c4   :  { %4329 = vmatpush3.bf16.msra.mxu0 %v4328_v46 }
 0x1c5   :  { %4361 = vmatpush3.bf16.msra.mxu1 %v4360_v63 }
 0x1c7   :  { %3054 = vmatmul.mubr.f32.vlgmr.msra.gmra.mrb[30].mxu0 %v1486_v12 }
 0x1c8   :  { %3124 = vmatmul.mubr.f32.vlgmr.msra.gmra.mrb[30].mxu1 %v1488_v0 }
 0x1da   :  { %v3264_v47 = vpop.f32.mrb[18].mxu0 }
 0x1db   :  { %v3299_v48 = vpop.f32.mrb[18].mxu1  ;;  %v3265_v6 = vpop.f32.mrb[19].mxu0 }
 0x1dc   :  { %v3266_v49 = vadd.f32 %v3265_v6, %v3264_v47  ;;  %v3300_v5 = vpop.f32.mrb[19].mxu1 }
 0x1dd   :  { %v3301_v61 = vadd.f32 %v3300_v5, %v3299_v48 }
 0x1de   :  { %v2216_v8 = vadd.f32 %v3266_v49, %v2146_v60 }
 0x1e0   :  { %v2286_v24 = vadd.f32 %v3301_v61, %v2216_v8 }
 0x1fa   :  { %v3334_v50 = vpop.f32.mrb[20].mxu0 }
 0x1fb   :  { %v3369_v4 = vpop.f32.mrb[20].mxu1  ;;  %v3335_v3 = vpop.f32.mrb[21].mxu0 }
 0x1fc   :  { %v3336_v37 = vadd.f32 %v3335_v3, %v3334_v50  ;;  %v3370_v32 = vpop.f32.mrb[21].mxu1 }
 0x1fd   :  { %v3371_v9 = vadd.f32 %v3370_v32, %v3369_v4 }
 0x1fe   :  { %v2356_v41 = vadd.f32 %v3336_v37, %v2286_v24 }
 0x200   :  { %v2426_v14 = vadd.f32 %v3371_v9, %v2356_v41 }
 0x21a   :  { %v3404_v10 = vpop.f32.mrb[22].mxu0 }
 0x21b   :  { %v3439_v13 = vpop.f32.mrb[22].mxu1  ;;  %v3405_v54 = vpop.f32.mrb[23].mxu0 }
 0x21c   :  { %v3406_v45 = vadd.f32 %v3405_v54, %v3404_v10  ;;  %v3440_v15 = vpop.f32.mrb[23].mxu1 }
 0x21d   :  { %v3441_v2 = vadd.f32 %v3440_v15, %v3439_v13 }
 0x21e   :  { %v2496_v31 = vadd.f32 %v3406_v45, %v2426_v14 }
 0x220   :  { %v2566_v16 = vadd.f32 %v3441_v2, %v2496_v31 }
 0x23a   :  { %v3474_v29 = vpop.f32.mrb[24].mxu0 }
 0x23b   :  { %v3509_v11 = vpop.f32.mrb[24].mxu1  ;;  %v3475_v55 = vpop.f32.mrb[25].mxu0 }
 0x23c   :  { %v3476_v19 = vadd.f32 %v3475_v55, %v3474_v29  ;;  %v3510_v20 = vpop.f32.mrb[25].mxu1 }
 0x23d   :  { %v3511_v52 = vadd.f32 %v3510_v20, %v3509_v11 }
 0x23e   :  { %v2636_v21 = vadd.f32 %v3476_v19, %v2566_v16 }
 0x240   :  { %v2706_v35 = vadd.f32 %v3511_v52, %v2636_v21 }
 0x25a   :  { %v3544_v1 = vpop.f32.mrb[26].mxu0 }
 0x25b   :  { %v3579_v7 = vpop.f32.mrb[26].mxu1  ;;  %v3545_v25 = vpop.f32.mrb[27].mxu0 }
 0x25c   :  { %v3546_v27 = vadd.f32 %v3545_v25, %v3544_v1  ;;  %v3580_v23 = vpop.f32.mrb[27].mxu1 }
 0x25d   :  { %v3581_v28 = vadd.f32 %v3580_v23, %v3579_v7 }
 0x25e   :  { %v2776_v34 = vadd.f32 %v3546_v27, %v2706_v35 }
 0x260   :  { %v2846_v30 = vadd.f32 %v3581_v28, %v2776_v34 }
 0x27a   :  { %v3614_v38 = vpop.f32.mrb[28].mxu0 }
 0x27b   :  { %v3649_v39 = vpop.f32.mrb[28].mxu1  ;;  %v3615_v42 = vpop.f32.mrb[29].mxu0 }
 0x27c   :  { %v3616_v40 = vadd.f32 %v3615_v42, %v3614_v38  ;;  %v3650_v53 = vpop.f32.mrb[29].mxu1 }
 0x27d   :  { %v3651_v18 = vadd.f32 %v3650_v53, %v3649_v39 }
 0x27e   :  { %v2916_v43 = vadd.f32 %v3616_v40, %v2846_v30 }
 0x280   :  { %v2986_v44 = vadd.f32 %v3651_v18, %v2916_v43 }
 0x29a   :  { %v3684_v22 = vpop.f32.mrb[30].mxu0 }
 0x29b   :  { %v3719_v17 = vpop.f32.mrb[30].mxu1  ;;  %v3685_v57 = vpop.f32.mrb[31].mxu0 }
 0x29c   :  { %v3686_v51 = vadd.f32 %v3685_v57, %v3684_v22  ;;  %v3720_v33 = vpop.f32.mrb[31].mxu1 }
 0x29d   :  { %v3721_v26 = vadd.f32 %v3720_v33, %v3719_v17 }
 0x29e   :  { %v3056_v56 = vadd.f32 %v3686_v51, %v2986_v44 }
 0x2a0   :  { %v3126_v58 = vadd.f32 %v3721_v26, %v3056_v56 }
 0x2a2   :  { %v3129_v59 = vmax.f32 %v3126_v58, 0.0 }
 0x2a4   :  { %3130 = vst [vmem:[#allocation2] sm:$0xff] %v3129_v59 }
 0x2a5   :  { %4375 = shalt.err (!%p4372_p4)
}
 0x2a6   :  { %s4376_s18 = scalar_lea.hbm %s6601_s5, 128 }
 0x2a7   :  { %p4377_p5 = scmp.ne.s32.totalorder %s6601_s5, %s4376_s18  ;;  %p4380_p6 = scmp.lt.u32.totalorder %s4376_s18, %s6601_s5 }
 0x2a9   :  { %p4382_p7 = pnand %p4380_p6, %p4377_p5 }
 0x2ab   :  { %4385 = shalt.err (!%p4382_p7)
}
 0x2ac   :  { %3140 = dma.vmem_to_hbm [thread:$0]  %s3138_s14, 128, %s6601_s5, [#allocation3]  }
 0x2ad   :  { %4386 = dma.done.wait [#allocation3], 128  }
 0x2ae   :  { %4387 = vsyncadd [#allocation3], 4294967168 }
 0x2af   :  { %3144 = vsyncpa [#allocation3], 1 }

</bundles_post_ra>
